<compile_context>
chip_gen: v7x
topology: tpu7x:2x2x1
jax: 0.10.0
libtpu: 0.0.40
codegen_flags: <defaults>
</compile_context>

<pallas_src>
import functools
import math

import jax
import jax.numpy as jnp
import numpy as np
from jax import lax
from jax.experimental import pallas as pl
from jax.experimental.pallas import tpu as pltpu

EPS = 1e-5  # nn.LayerNorm default eps


def _layernorm(x, g, b):
    mean = jnp.mean(x, axis=-1, keepdims=True)
    var = jnp.mean(jnp.square(x - mean), axis=-1, keepdims=True)
    return (x - mean) * lax.rsqrt(var + EPS) * g + b


def _gelu_exact(x):
    # matches F.gelu default (erf-based)
    return 0.5 * x * (1.0 + lax.erf(x * (1.0 / math.sqrt(2.0))))


def transformer_block_kernel(
    batch, seq, num_heads, head_dim,
    # inputs
    x_ref,
    g1_ref, b1_ref,
    qkvw_ref, qkvb_ref,
    ow_ref, ob_ref,
    gff_ref, bff_ref,
    gw1_ref, gb1_ref,
    w2_ref, b2_ref,
    # outputs
    out_ref,
):
    """Whole block fused in VMEM; activations are (B*S, E)."""
    E = num_heads * head_dim
    bf16 = jnp.bfloat16

    x = x_ref[...]  # (B*S, E) f32

    # ---- attention sub-block: x = x + OutProj(MHA(LN1(x))) ----
    xn = _layernorm(x, g1_ref[...], b1_ref[...]).astype(bf16)

    # Fused QKV projection, M = B*S rows, f32 accumulate.  The 1/sqrt(hd)
    # scale is already folded into the q columns of qkvw / qkvb.
    qkv = jnp.dot(xn, qkvw_ref[...],
                  preferred_element_type=jnp.float32) + qkvb_ref[...]
    qkv = qkv.astype(bf16)  # one full-width (B*S, 3E) cast

    # Split heads by reshaping only the leading (batch*seq) axis — cheap.
    q3 = qkv[:, :E].reshape(batch, seq, E)
    k3 = qkv[:, E:2 * E].reshape(batch, seq, E)
    v3 = qkv[:, 2 * E:].reshape(batch, seq, E)

    # Per-head attention (static unroll; num_heads is small).
    # TODO(synk): switch to lax.fori_loop(unroll=True) if num_heads grows
    # beyond ~4 to bound vreg live ranges.
    ctx_heads = []
    for h in range(num_heads):
        sl = slice(h * head_dim, (h + 1) * head_dim)
        qh, kh, vh = q3[..., sl], k3[..., sl], v3[..., sl]
        # scores = qh @ kh^T (contract last dims, batched over B)
        s = jnp.einsum('bqd,bkd->bqk', qh, kh,
                       preferred_element_type=jnp.float32)
        s = s - jnp.max(s, axis=-1, keepdims=True)
        p = jnp.exp(s)
        p = p * pl.reciprocal(jnp.sum(p, axis=-1, keepdims=True), approx=True)
        ctx_heads.append(jnp.einsum('bqk,bkd->bqd', p.astype(bf16), vh,
                                    preferred_element_type=jnp.float32))

    # Concat head contexts then ONE K=E output projection dot.
    ctx = jnp.concatenate(ctx_heads, axis=-1).reshape(batch * seq, E)
    attn = jnp.dot(ctx.astype(bf16), ow_ref[...],
                   preferred_element_type=jnp.float32) + ob_ref[...]
    x = x + attn  # residual (dropout == identity)

    # ---- gated feed-forward: x = x + W2(gelu(W1(LN(x))) * sigmoid(G(LN(x)))) ----
    xn2 = _layernorm(x, gff_ref[...], bff_ref[...]).astype(bf16)
    ff_dim = gw1_ref.shape[1] // 2
    gh = jnp.dot(xn2, gw1_ref[...],
                 preferred_element_type=jnp.float32) + gb1_ref[...]
    gate = jax.nn.sigmoid(gh[:, :ff_dim])
    h1 = _gelu_exact(gh[:, ff_dim:])
    hmid = (h1 * gate).astype(bf16)
    ff = jnp.dot(hmid, w2_ref[...],
                 preferred_element_type=jnp.float32) + b2_ref[...]

    out_ref[...] = x + ff


def nexus_transformer_block(x, params, num_heads):
    B, S, E = x.shape
    head_dim = E // num_heads
    bf16 = jnp.bfloat16
    scale = 1.0 / math.sqrt(head_dim)

    # ---- wrapper-side packing (plain JAX, outside the kernel) ----
    # fused QKV weight/bias (scale folded into the q columns), fused gate+W1.
    qkvw = jnp.concatenate(
        [params["qw"] * scale, params["kw"], params["vw"]], axis=1).astype(bf16)
    qkvb = jnp.concatenate(
        [params["qb"] * scale, params["kb"], params["vb"]], axis=1)
    gw1 = jnp.concatenate([params["gw"], params["w1"]], axis=1).astype(bf16)
    gb1 = jnp.concatenate([params["gb"], params["b1f"]], axis=1)
    ow = params["ow"].astype(bf16)
    w2 = params["w2"].astype(bf16)

    weights = [
        params["g1"], params["b1"],
        qkvw, qkvb, ow, params["ob"],
        params["gff"], params["bff"],
        gw1, gb1, w2, params["b2f"],
    ]

    # Flatten batch*seq so every dense matmul sees M = B*S rows.
    x2d = x.reshape(B * S, E)

    def full_spec(a):
        nd = a.ndim
        return pl.BlockSpec(a.shape, lambda i, _nd=nd: (0,) * _nd)

    in_specs = [pl.BlockSpec((B * S, E), lambda i: (0, 0))] + [
        full_spec(w) for w in weights
    ]
    out_spec = pl.BlockSpec((B * S, E), lambda i: (0, 0))

    kernel = functools.partial(transformer_block_kernel, B, S, num_heads, head_dim)
    out2d = pl.pallas_call(
        kernel,
        out_shape=jax.ShapeDtypeStruct((B * S, E), x.dtype),
        grid_spec=pltpu.PrefetchScalarGridSpec(
            num_scalar_prefetch=0,
            grid=(1,),  # single step: whole batch fused (see header comment)
            in_specs=in_specs,
            out_specs=out_spec,
        ),
        compiler_params=pltpu.CompilerParams(
            dimension_semantics=("arbitrary",),
            vmem_limit_bytes=32 * 1024 * 1024,
        ),
    )(x2d, *weights)
    return out2d.reshape(B, S, E)


def init_params(key, embed_dim, ff_dim):
    """Deterministic PyTorch-Linear-like init (uniform +/- 1/sqrt(fan_in))."""
    ks = jax.random.split(key, 16)

    def lin(k, fan_in, fan_out):
        bound = 1.0 / math.sqrt(fan_in)
        kw, kb = jax.random.split(k)
        w = jax.random.uniform(kw, (fan_in, fan_out), jnp.float32, -bound, bound)
        b = jax.random.uniform(kb, (1, fan_out), jnp.float32, -bound, bound)
        return w, b

    p = {}
    # norm1 (pre-attention) and feed-forward internal norm: weight=1, bias=0
    p["g1"] = jnp.ones((1, embed_dim), jnp.float32)
    p["b1"] = jnp.zeros((1, embed_dim), jnp.float32)
    p["gff"] = jnp.ones((1, embed_dim), jnp.float32)
    p["bff"] = jnp.zeros((1, embed_dim), jnp.float32)
    # attention projections
    p["qw"], p["qb"] = lin(ks[0], embed_dim, embed_dim)
    p["kw"], p["kb"] = lin(ks[1], embed_dim, embed_dim)
    p["vw"], p["vb"] = lin(ks[2], embed_dim, embed_dim)
    p["ow"], p["ob"] = lin(ks[3], embed_dim, embed_dim)
    # gated feed-forward
    p["gw"], p["gb"] = lin(ks[4], embed_dim, ff_dim)
    p["w1"], p["b1f"] = lin(ks[5], embed_dim, ff_dim)
    p["w2"], p["b2f"] = lin(ks[6], ff_dim, embed_dim)
    return p
    # note: norm2 of NexusTransformerBlock is unused in its forward(), so omitted.


def reference_block(x, params, num_heads):
    """Pure-JAX f32 reference mirroring the PyTorch forward (eval, no mask)."""
    B, S, E = x.shape
    hd = E // num_heads

    def ln(t, g, b):
        m = t.mean(-1, keepdims=True)
        v = ((t - m) ** 2).mean(-1, keepdims=True)
        return (t - m) / jnp.sqrt(v + EPS) * g + b

    xn = ln(x, params["g1"], params["b1"])
    q = xn @ params["qw"] + params["qb"]
    k = xn @ params["kw"] + params["kb"]
    v = xn @ params["vw"] + params["vb"]
    q = q.reshape(B, S, num_heads, hd).transpose(0, 2, 1, 3)
    k = k.reshape(B, S, num_heads, hd).transpose(0, 2, 1, 3)
    v = v.reshape(B, S, num_heads, hd).transpose(0, 2, 1, 3)
    s = jnp.einsum("bhqd,bhkd->bhqk", q, k) / math.sqrt(hd)
    p = jax.nn.softmax(s, axis=-1)
    ctx = jnp.einsum("bhqk,bhkd->bhqd", p, v).transpose(0, 2, 1, 3).reshape(B, S, E)
    attn = ctx @ params["ow"] + params["ob"]
    x = x + attn

    xn2 = ln(x, params["gff"], params["bff"])
    gate = jax.nn.sigmoid(xn2 @ params["gw"] + params["gb"])
    pre = xn2 @ params["w1"] + params["b1f"]
    h1 = 0.5 * pre * (1.0 + jax.lax.erf(pre / math.sqrt(2.0)))
    ff = (h1 * gate) @ params["w2"] + params["b2f"]
    return x + ff


if __name__ == "__main__":
    B, S, E = 2, 8, 32
    NUM_HEADS = 4
    FF_DIM = 64

    key = jax.random.PRNGKey(0)
    kx, kp = jax.random.split(key)
    x = jax.random.normal(kx, (B, S, E), jnp.float32)
    params = init_params(kp, E, FF_DIM)

    out = nexus_transformer_block(x, params, NUM_HEADS)
    out = jax.block_until_ready(out)

    ref = jax.block_until_ready(reference_block(x, params, NUM_HEADS))
    # bf16 matmul operands + approximate softmax reciprocal => looser tolerance
    # than a pure-f32 implementation (inference-grade accuracy).
    np.testing.assert_allclose(np.asarray(out), np.asarray(ref), rtol=5e-2, atol=5e-2)

    print("KERNEL_OK")
</pallas_src>

<mosaic_0001>
module attributes {stable_mosaic.version = 11 : i64} {
  func.func @transformer_block_kernel(%arg0: i32, %arg1: memref<16x32xf32, #tpu.memory_space<vmem>>, %arg2: memref<1x32xf32, #tpu.memory_space<vmem>>, %arg3: memref<1x32xf32, #tpu.memory_space<vmem>>, %arg4: memref<32x96xbf16, #tpu.memory_space<vmem>>, %arg5: memref<1x96xf32, #tpu.memory_space<vmem>>, %arg6: memref<32x32xbf16, #tpu.memory_space<vmem>>, %arg7: memref<1x32xf32, #tpu.memory_space<vmem>>, %arg8: memref<1x32xf32, #tpu.memory_space<vmem>>, %arg9: memref<1x32xf32, #tpu.memory_space<vmem>>, %arg10: memref<32x128xbf16, #tpu.memory_space<vmem>>, %arg11: memref<1x128xf32, #tpu.memory_space<vmem>>, %arg12: memref<64x32xbf16, #tpu.memory_space<vmem>>, %arg13: memref<1x32xf32, #tpu.memory_space<vmem>>, %arg14: memref<16x32xf32, #tpu.memory_space<vmem>>) attributes {dimension_semantics = [#tpu.dimension_semantics<arbitrary>], iteration_bounds = array<i64: 1>, scalar_prefetch = 0 : i64, scratch_operands = 0 : i64, tpu.core_type = #tpu.core_type<tc>, window_params = [{pipeline_mode = #tpu.pipeline_mode<synchronous>, transform_indices = @transform_0, window_bounds = array<i64: 16, 32>}, {pipeline_mode = #tpu.pipeline_mode<synchronous>, transform_indices = @transform_1, window_bounds = array<i64: 1, 32>}, {pipeline_mode = #tpu.pipeline_mode<synchronous>, transform_indices = @transform_2, window_bounds = array<i64: 1, 32>}, {pipeline_mode = #tpu.pipeline_mode<synchronous>, transform_indices = @transform_3, window_bounds = array<i64: 32, 96>}, {pipeline_mode = #tpu.pipeline_mode<synchronous>, transform_indices = @transform_4, window_bounds = array<i64: 1, 96>}, {pipeline_mode = #tpu.pipeline_mode<synchronous>, transform_indices = @transform_5, window_bounds = array<i64: 32, 32>}, {pipeline_mode = #tpu.pipeline_mode<synchronous>, transform_indices = @transform_6, window_bounds = array<i64: 1, 32>}, {pipeline_mode = #tpu.pipeline_mode<synchronous>, transform_indices = @transform_7, window_bounds = array<i64: 1, 32>}, {pipeline_mode = #tpu.pipeline_mode<synchronous>, transform_indices = @transform_8, window_bounds = array<i64: 1, 32>}, {pipeline_mode = #tpu.pipeline_mode<synchronous>, transform_indices = @transform_9, window_bounds = array<i64: 32, 128>}, {pipeline_mode = #tpu.pipeline_mode<synchronous>, transform_indices = @transform_10, window_bounds = array<i64: 1, 128>}, {pipeline_mode = #tpu.pipeline_mode<synchronous>, transform_indices = @transform_11, window_bounds = array<i64: 64, 32>}, {pipeline_mode = #tpu.pipeline_mode<synchronous>, transform_indices = @transform_12, window_bounds = array<i64: 1, 32>}, {pipeline_mode = #tpu.pipeline_mode<synchronous>, transform_indices = @transform_13, window_bounds = array<i64: 16, 32>}]} {
    %c0 = arith.constant 0 : index
    %c0_0 = arith.constant 0 : index
    %0 = vector.load %arg1[%c0, %c0_0] : memref<16x32xf32, #tpu.memory_space<vmem>>, vector<16x32xf32>
    %c0_1 = arith.constant 0 : index
    %c0_2 = arith.constant 0 : index
    %1 = vector.load %arg2[%c0_1, %c0_2] : memref<1x32xf32, #tpu.memory_space<vmem>>, vector<1x32xf32>
    %c0_3 = arith.constant 0 : index
    %c0_4 = arith.constant 0 : index
    %2 = vector.load %arg3[%c0_3, %c0_4] : memref<1x32xf32, #tpu.memory_space<vmem>>, vector<1x32xf32>
    %cst = arith.constant dense<0.000000e+00> : vector<16xf32>
    %3 = vector.multi_reduction <add>, %0, %cst [1] : vector<16x32xf32> to vector<16xf32>
    %4 = vector.shape_cast %3 : vector<16xf32> to vector<16x1xf32>
    %cst_5 = arith.constant 3.200000e+01 : f32
    %5 = vector.broadcast %cst_5 : f32 to vector<16x1xf32>
    %6 = arith.divf %4, %5 : vector<16x1xf32>
    %7 = vector.broadcast %6 : vector<16x1xf32> to vector<16x32xf32>
    %8 = arith.subf %0, %7 : vector<16x32xf32>
    %9 = arith.mulf %8, %8 : vector<16x32xf32>
    %cst_6 = arith.constant dense<0.000000e+00> : vector<16xf32>
    %10 = vector.multi_reduction <add>, %9, %cst_6 [1] : vector<16x32xf32> to vector<16xf32>
    %11 = vector.shape_cast %10 : vector<16xf32> to vector<16x1xf32>
    %cst_7 = arith.constant 3.200000e+01 : f32
    %12 = vector.broadcast %cst_7 : f32 to vector<16x1xf32>
    %13 = arith.divf %11, %12 : vector<16x1xf32>
    %14 = vector.broadcast %6 : vector<16x1xf32> to vector<16x32xf32>
    %15 = arith.subf %0, %14 : vector<16x32xf32>
    %cst_8 = arith.constant 9.99999974E-6 : f32
    %16 = vector.broadcast %cst_8 : f32 to vector<16x1xf32>
    %17 = arith.addf %13, %16 : vector<16x1xf32>
    %18 = math.rsqrt %17 : vector<16x1xf32>
    %19 = vector.broadcast %18 : vector<16x1xf32> to vector<16x32xf32>
    %20 = arith.mulf %15, %19 : vector<16x32xf32>
    %21 = vector.broadcast %1 : vector<1x32xf32> to vector<16x32xf32>
    %22 = arith.mulf %20, %21 : vector<16x32xf32>
    %23 = vector.broadcast %2 : vector<1x32xf32> to vector<16x32xf32>
    %24 = arith.addf %22, %23 : vector<16x32xf32>
    %25 = arith.truncf %24 : vector<16x32xf32> to vector<16x32xbf16>
    %c0_9 = arith.constant 0 : index
    %c0_10 = arith.constant 0 : index
    %26 = vector.load %arg4[%c0_9, %c0_10] : memref<32x96xbf16, #tpu.memory_space<vmem>>, vector<32x96xbf16>
    %cst_11 = arith.constant dense<0.000000e+00> : vector<16x96xf32>
    %27 = tpu.matmul %25, %26, %cst_11 {dimension_numbers = #tpu.dot_dimension_numbers<[1], [0], [0], [1], [0, 0, 1, 1], [], []>} : vector<16x32xbf16>, vector<32x96xbf16>, vector<16x96xf32> -> vector<16x96xf32>
    %c0_12 = arith.constant 0 : index
    %c0_13 = arith.constant 0 : index
    %28 = vector.load %arg5[%c0_12, %c0_13] : memref<1x96xf32, #tpu.memory_space<vmem>>, vector<1x96xf32>
    %29 = vector.broadcast %28 : vector<1x96xf32> to vector<16x96xf32>
    %30 = arith.addf %27, %29 : vector<16x96xf32>
    %31 = arith.truncf %30 : vector<16x96xf32> to vector<16x96xbf16>
    %32 = vector.extract_strided_slice %31 {offsets = [0, 0], sizes = [16, 32], strides = [1, 1]} : vector<16x96xbf16> to vector<16x32xbf16>
    %33 = vector.shape_cast %32 : vector<16x32xbf16> to vector<2x8x32xbf16>
    %34 = vector.extract_strided_slice %31 {offsets = [0, 32], sizes = [16, 32], strides = [1, 1]} : vector<16x96xbf16> to vector<16x32xbf16>
    %35 = vector.shape_cast %34 : vector<16x32xbf16> to vector<2x8x32xbf16>
    %36 = vector.extract_strided_slice %31 {offsets = [0, 64], sizes = [16, 32], strides = [1, 1]} : vector<16x96xbf16> to vector<16x32xbf16>
    %37 = vector.shape_cast %36 : vector<16x32xbf16> to vector<2x8x32xbf16>
    %38 = vector.extract_strided_slice %33 {offsets = [0, 0, 0], sizes = [2, 8, 8], strides = [1, 1, 1]} : vector<2x8x32xbf16> to vector<2x8x8xbf16>
    %39 = vector.extract_strided_slice %35 {offsets = [0, 0, 0], sizes = [2, 8, 8], strides = [1, 1, 1]} : vector<2x8x32xbf16> to vector<2x8x8xbf16>
    %40 = vector.extract_strided_slice %37 {offsets = [0, 0, 0], sizes = [2, 8, 8], strides = [1, 1, 1]} : vector<2x8x32xbf16> to vector<2x8x8xbf16>
    "tpu.trace_start"() <{level = 10 : i32, message = "bqd,bkd->bqk"}> : () -> ()
    %cst_14 = arith.constant dense<0.000000e+00> : vector<2x8x8xf32>
    %41 = tpu.matmul %38, %39, %cst_14 {dimension_numbers = #tpu.dot_dimension_numbers<[2], [2], [1], [1], [0, 0, 0, 1, 1, 1], [0], [0]>} : vector<2x8x8xbf16>, vector<2x8x8xbf16>, vector<2x8x8xf32> -> vector<2x8x8xf32>
    "tpu.trace_stop"() : () -> ()
    %cst_15 = arith.constant dense<0xFF800000> : vector<2x8xf32>
    %42 = vector.multi_reduction <maximumf>, %41, %cst_15 [2] : vector<2x8x8xf32> to vector<2x8xf32>
    %43 = vector.shape_cast %42 : vector<2x8xf32> to vector<2x8x1xf32>
    %44 = vector.broadcast %43 : vector<2x8x1xf32> to vector<2x8x8xf32>
    %45 = arith.subf %41, %44 : vector<2x8x8xf32>
    %46 = math.exp %45 : vector<2x8x8xf32>
    %cst_16 = arith.constant dense<0.000000e+00> : vector<2x8xf32>
    %47 = vector.multi_reduction <add>, %46, %cst_16 [2] : vector<2x8x8xf32> to vector<2x8xf32>
    %48 = vector.shape_cast %47 : vector<2x8xf32> to vector<2x8x1xf32>
    %49 = tpu.reciprocal %48 {approx = true} : vector<2x8x1xf32> -> vector<2x8x1xf32>
    %50 = vector.broadcast %49 : vector<2x8x1xf32> to vector<2x8x8xf32>
    %51 = arith.mulf %46, %50 : vector<2x8x8xf32>
    %52 = arith.truncf %51 : vector<2x8x8xf32> to vector<2x8x8xbf16>
    "tpu.trace_start"() <{level = 10 : i32, message = "bqk,bkd->bqd"}> : () -> ()
    %cst_17 = arith.constant dense<0.000000e+00> : vector<2x8x8xf32>
    %53 = tpu.matmul %52, %40, %cst_17 {dimension_numbers = #tpu.dot_dimension_numbers<[2], [1], [1], [2], [0, 0, 0, 1, 1, 2], [0], [0]>} : vector<2x8x8xbf16>, vector<2x8x8xbf16>, vector<2x8x8xf32> -> vector<2x8x8xf32>
    "tpu.trace_stop"() : () -> ()
    %54 = vector.extract_strided_slice %33 {offsets = [0, 0, 8], sizes = [2, 8, 8], strides = [1, 1, 1]} : vector<2x8x32xbf16> to vector<2x8x8xbf16>
    %55 = vector.extract_strided_slice %35 {offsets = [0, 0, 8], sizes = [2, 8, 8], strides = [1, 1, 1]} : vector<2x8x32xbf16> to vector<2x8x8xbf16>
    %56 = vector.extract_strided_slice %37 {offsets = [0, 0, 8], sizes = [2, 8, 8], strides = [1, 1, 1]} : vector<2x8x32xbf16> to vector<2x8x8xbf16>
    "tpu.trace_start"() <{level = 10 : i32, message = "bqd,bkd->bqk"}> : () -> ()
    %cst_18 = arith.constant dense<0.000000e+00> : vector<2x8x8xf32>
    %57 = tpu.matmul %54, %55, %cst_18 {dimension_numbers = #tpu.dot_dimension_numbers<[2], [2], [1], [1], [0, 0, 0, 1, 1, 1], [0], [0]>} : vector<2x8x8xbf16>, vector<2x8x8xbf16>, vector<2x8x8xf32> -> vector<2x8x8xf32>
    "tpu.trace_stop"() : () -> ()
    %cst_19 = arith.constant dense<0xFF800000> : vector<2x8xf32>
    %58 = vector.multi_reduction <maximumf>, %57, %cst_19 [2] : vector<2x8x8xf32> to vector<2x8xf32>
    %59 = vector.shape_cast %58 : vector<2x8xf32> to vector<2x8x1xf32>
    %60 = vector.broadcast %59 : vector<2x8x1xf32> to vector<2x8x8xf32>
    %61 = arith.subf %57, %60 : vector<2x8x8xf32>
    %62 = math.exp %61 : vector<2x8x8xf32>
    %cst_20 = arith.constant dense<0.000000e+00> : vector<2x8xf32>
    %63 = vector.multi_reduction <add>, %62, %cst_20 [2] : vector<2x8x8xf32> to vector<2x8xf32>
    %64 = vector.shape_cast %63 : vector<2x8xf32> to vector<2x8x1xf32>
    %65 = tpu.reciprocal %64 {approx = true} : vector<2x8x1xf32> -> vector<2x8x1xf32>
    %66 = vector.broadcast %65 : vector<2x8x1xf32> to vector<2x8x8xf32>
    %67 = arith.mulf %62, %66 : vector<2x8x8xf32>
    %68 = arith.truncf %67 : vector<2x8x8xf32> to vector<2x8x8xbf16>
    "tpu.trace_start"() <{level = 10 : i32, message = "bqk,bkd->bqd"}> : () -> ()
    %cst_21 = arith.constant dense<0.000000e+00> : vector<2x8x8xf32>
    %69 = tpu.matmul %68, %56, %cst_21 {dimension_numbers = #tpu.dot_dimension_numbers<[2], [1], [1], [2], [0, 0, 0, 1, 1, 2], [0], [0]>} : vector<2x8x8xbf16>, vector<2x8x8xbf16>, vector<2x8x8xf32> -> vector<2x8x8xf32>
    "tpu.trace_stop"() : () -> ()
    %70 = vector.extract_strided_slice %33 {offsets = [0, 0, 16], sizes = [2, 8, 8], strides = [1, 1, 1]} : vector<2x8x32xbf16> to vector<2x8x8xbf16>
    %71 = vector.extract_strided_slice %35 {offsets = [0, 0, 16], sizes = [2, 8, 8], strides = [1, 1, 1]} : vector<2x8x32xbf16> to vector<2x8x8xbf16>
    %72 = vector.extract_strided_slice %37 {offsets = [0, 0, 16], sizes = [2, 8, 8], strides = [1, 1, 1]} : vector<2x8x32xbf16> to vector<2x8x8xbf16>
    "tpu.trace_start"() <{level = 10 : i32, message = "bqd,bkd->bqk"}> : () -> ()
    %cst_22 = arith.constant dense<0.000000e+00> : vector<2x8x8xf32>
    %73 = tpu.matmul %70, %71, %cst_22 {dimension_numbers = #tpu.dot_dimension_numbers<[2], [2], [1], [1], [0, 0, 0, 1, 1, 1], [0], [0]>} : vector<2x8x8xbf16>, vector<2x8x8xbf16>, vector<2x8x8xf32> -> vector<2x8x8xf32>
    "tpu.trace_stop"() : () -> ()
    %cst_23 = arith.constant dense<0xFF800000> : vector<2x8xf32>
    %74 = vector.multi_reduction <maximumf>, %73, %cst_23 [2] : vector<2x8x8xf32> to vector<2x8xf32>
    %75 = vector.shape_cast %74 : vector<2x8xf32> to vector<2x8x1xf32>
    %76 = vector.broadcast %75 : vector<2x8x1xf32> to vector<2x8x8xf32>
    %77 = arith.subf %73, %76 : vector<2x8x8xf32>
    %78 = math.exp %77 : vector<2x8x8xf32>
    %cst_24 = arith.constant dense<0.000000e+00> : vector<2x8xf32>
    %79 = vector.multi_reduction <add>, %78, %cst_24 [2] : vector<2x8x8xf32> to vector<2x8xf32>
    %80 = vector.shape_cast %79 : vector<2x8xf32> to vector<2x8x1xf32>
    %81 = tpu.reciprocal %80 {approx = true} : vector<2x8x1xf32> -> vector<2x8x1xf32>
    %82 = vector.broadcast %81 : vector<2x8x1xf32> to vector<2x8x8xf32>
    %83 = arith.mulf %78, %82 : vector<2x8x8xf32>
    %84 = arith.truncf %83 : vector<2x8x8xf32> to vector<2x8x8xbf16>
    "tpu.trace_start"() <{level = 10 : i32, message = "bqk,bkd->bqd"}> : () -> ()
    %cst_25 = arith.constant dense<0.000000e+00> : vector<2x8x8xf32>
    %85 = tpu.matmul %84, %72, %cst_25 {dimension_numbers = #tpu.dot_dimension_numbers<[2], [1], [1], [2], [0, 0, 0, 1, 1, 2], [0], [0]>} : vector<2x8x8xbf16>, vector<2x8x8xbf16>, vector<2x8x8xf32> -> vector<2x8x8xf32>
    "tpu.trace_stop"() : () -> ()
    %86 = vector.extract_strided_slice %33 {offsets = [0, 0, 24], sizes = [2, 8, 8], strides = [1, 1, 1]} : vector<2x8x32xbf16> to vector<2x8x8xbf16>
    %87 = vector.extract_strided_slice %35 {offsets = [0, 0, 24], sizes = [2, 8, 8], strides = [1, 1, 1]} : vector<2x8x32xbf16> to vector<2x8x8xbf16>
    %88 = vector.extract_strided_slice %37 {offsets = [0, 0, 24], sizes = [2, 8, 8], strides = [1, 1, 1]} : vector<2x8x32xbf16> to vector<2x8x8xbf16>
    "tpu.trace_start"() <{level = 10 : i32, message = "bqd,bkd->bqk"}> : () -> ()
    %cst_26 = arith.constant dense<0.000000e+00> : vector<2x8x8xf32>
    %89 = tpu.matmul %86, %87, %cst_26 {dimension_numbers = #tpu.dot_dimension_numbers<[2], [2], [1], [1], [0, 0, 0, 1, 1, 1], [0], [0]>} : vector<2x8x8xbf16>, vector<2x8x8xbf16>, vector<2x8x8xf32> -> vector<2x8x8xf32>
    "tpu.trace_stop"() : () -> ()
    %cst_27 = arith.constant dense<0xFF800000> : vector<2x8xf32>
    %90 = vector.multi_reduction <maximumf>, %89, %cst_27 [2] : vector<2x8x8xf32> to vector<2x8xf32>
    %91 = vector.shape_cast %90 : vector<2x8xf32> to vector<2x8x1xf32>
    %92 = vector.broadcast %91 : vector<2x8x1xf32> to vector<2x8x8xf32>
    %93 = arith.subf %89, %92 : vector<2x8x8xf32>
    %94 = math.exp %93 : vector<2x8x8xf32>
    %cst_28 = arith.constant dense<0.000000e+00> : vector<2x8xf32>
    %95 = vector.multi_reduction <add>, %94, %cst_28 [2] : vector<2x8x8xf32> to vector<2x8xf32>
    %96 = vector.shape_cast %95 : vector<2x8xf32> to vector<2x8x1xf32>
    %97 = tpu.reciprocal %96 {approx = true} : vector<2x8x1xf32> -> vector<2x8x1xf32>
    %98 = vector.broadcast %97 : vector<2x8x1xf32> to vector<2x8x8xf32>
    %99 = arith.mulf %94, %98 : vector<2x8x8xf32>
    %100 = arith.truncf %99 : vector<2x8x8xf32> to vector<2x8x8xbf16>
    "tpu.trace_start"() <{level = 10 : i32, message = "bqk,bkd->bqd"}> : () -> ()
    %cst_29 = arith.constant dense<0.000000e+00> : vector<2x8x8xf32>
    %101 = tpu.matmul %100, %88, %cst_29 {dimension_numbers = #tpu.dot_dimension_numbers<[2], [1], [1], [2], [0, 0, 0, 1, 1, 2], [0], [0]>} : vector<2x8x8xbf16>, vector<2x8x8xbf16>, vector<2x8x8xf32> -> vector<2x8x8xf32>
    "tpu.trace_stop"() : () -> ()
    %102 = tpu.concatenate %53, %69, %85, %101 in 2 : vector<2x8x8xf32>, vector<2x8x8xf32>, vector<2x8x8xf32>, vector<2x8x8xf32> -> vector<2x8x32xf32>
    %103 = vector.shape_cast %102 : vector<2x8x32xf32> to vector<16x32xf32>
    %104 = arith.truncf %103 : vector<16x32xf32> to vector<16x32xbf16>
    %c0_30 = arith.constant 0 : index
    %c0_31 = arith.constant 0 : index
    %105 = vector.load %arg6[%c0_30, %c0_31] : memref<32x32xbf16, #tpu.memory_space<vmem>>, vector<32x32xbf16>
    %cst_32 = arith.constant dense<0.000000e+00> : vector<16x32xf32>
    %106 = tpu.matmul %104, %105, %cst_32 {dimension_numbers = #tpu.dot_dimension_numbers<[1], [0], [0], [1], [0, 0, 1, 1], [], []>} : vector<16x32xbf16>, vector<32x32xbf16>, vector<16x32xf32> -> vector<16x32xf32>
    %c0_33 = arith.constant 0 : index
    %c0_34 = arith.constant 0 : index
    %107 = vector.load %arg7[%c0_33, %c0_34] : memref<1x32xf32, #tpu.memory_space<vmem>>, vector<1x32xf32>
    %108 = vector.broadcast %107 : vector<1x32xf32> to vector<16x32xf32>
    %109 = arith.addf %106, %108 : vector<16x32xf32>
    %110 = arith.addf %0, %109 : vector<16x32xf32>
    %c0_35 = arith.constant 0 : index
    %c0_36 = arith.constant 0 : index
    %111 = vector.load %arg8[%c0_35, %c0_36] : memref<1x32xf32, #tpu.memory_space<vmem>>, vector<1x32xf32>
    %c0_37 = arith.constant 0 : index
    %c0_38 = arith.constant 0 : index
    %112 = vector.load %arg9[%c0_37, %c0_38] : memref<1x32xf32, #tpu.memory_space<vmem>>, vector<1x32xf32>
    %cst_39 = arith.constant dense<0.000000e+00> : vector<16xf32>
    %113 = vector.multi_reduction <add>, %110, %cst_39 [1] : vector<16x32xf32> to vector<16xf32>
    %114 = vector.shape_cast %113 : vector<16xf32> to vector<16x1xf32>
    %cst_40 = arith.constant 3.200000e+01 : f32
    %115 = vector.broadcast %cst_40 : f32 to vector<16x1xf32>
    %116 = arith.divf %114, %115 : vector<16x1xf32>
    %117 = vector.broadcast %116 : vector<16x1xf32> to vector<16x32xf32>
    %118 = arith.subf %110, %117 : vector<16x32xf32>
    %119 = arith.mulf %118, %118 : vector<16x32xf32>
    %cst_41 = arith.constant dense<0.000000e+00> : vector<16xf32>
    %120 = vector.multi_reduction <add>, %119, %cst_41 [1] : vector<16x32xf32> to vector<16xf32>
    %121 = vector.shape_cast %120 : vector<16xf32> to vector<16x1xf32>
    %cst_42 = arith.constant 3.200000e+01 : f32
    %122 = vector.broadcast %cst_42 : f32 to vector<16x1xf32>
    %123 = arith.divf %121, %122 : vector<16x1xf32>
    %124 = vector.broadcast %116 : vector<16x1xf32> to vector<16x32xf32>
    %125 = arith.subf %110, %124 : vector<16x32xf32>
    %cst_43 = arith.constant 9.99999974E-6 : f32
    %126 = vector.broadcast %cst_43 : f32 to vector<16x1xf32>
    %127 = arith.addf %123, %126 : vector<16x1xf32>
    %128 = math.rsqrt %127 : vector<16x1xf32>
    %129 = vector.broadcast %128 : vector<16x1xf32> to vector<16x32xf32>
    %130 = arith.mulf %125, %129 : vector<16x32xf32>
    %131 = vector.broadcast %111 : vector<1x32xf32> to vector<16x32xf32>
    %132 = arith.mulf %130, %131 : vector<16x32xf32>
    %133 = vector.broadcast %112 : vector<1x32xf32> to vector<16x32xf32>
    %134 = arith.addf %132, %133 : vector<16x32xf32>
    %135 = arith.truncf %134 : vector<16x32xf32> to vector<16x32xbf16>
    %c0_44 = arith.constant 0 : index
    %c0_45 = arith.constant 0 : index
    %136 = vector.load %arg10[%c0_44, %c0_45] : memref<32x128xbf16, #tpu.memory_space<vmem>>, vector<32x128xbf16>
    %cst_46 = arith.constant dense<0.000000e+00> : vector<16x128xf32>
    %137 = tpu.matmul %135, %136, %cst_46 {dimension_numbers = #tpu.dot_dimension_numbers<[1], [0], [0], [1], [0, 0, 1, 1], [], []>} : vector<16x32xbf16>, vector<32x128xbf16>, vector<16x128xf32> -> vector<16x128xf32>
    %c0_47 = arith.constant 0 : index
    %c0_48 = arith.constant 0 : index
    %138 = vector.load %arg11[%c0_47, %c0_48] : memref<1x128xf32, #tpu.memory_space<vmem>>, vector<1x128xf32>
    %139 = vector.broadcast %138 : vector<1x128xf32> to vector<16x128xf32>
    %140 = arith.addf %137, %139 : vector<16x128xf32>
    %141 = vector.extract_strided_slice %140 {offsets = [0, 0], sizes = [16, 64], strides = [1, 1]} : vector<16x128xf32> to vector<16x64xf32>
    %142 = arith.negf %141 : vector<16x64xf32>
    %143 = math.exp %142 : vector<16x64xf32>
    %cst_49 = arith.constant 1.000000e+00 : f32
    %144 = vector.broadcast %cst_49 : f32 to vector<16x64xf32>
    %145 = arith.addf %144, %143 : vector<16x64xf32>
    %146 = arith.divf %144, %145 : vector<16x64xf32>
    %147 = vector.extract_strided_slice %140 {offsets = [0, 64], sizes = [16, 64], strides = [1, 1]} : vector<16x128xf32> to vector<16x64xf32>
    %cst_50 = arith.constant 5.000000e-01 : f32
    %148 = vector.broadcast %cst_50 : f32 to vector<16x64xf32>
    %149 = arith.mulf %148, %147 : vector<16x64xf32>
    %cst_51 = arith.constant 0.707106769 : f32
    %150 = vector.broadcast %cst_51 : f32 to vector<16x64xf32>
    %151 = arith.mulf %147, %150 : vector<16x64xf32>
    %152 = math.erf %151 : vector<16x64xf32>
    %cst_52 = arith.constant 1.000000e+00 : f32
    %153 = vector.broadcast %cst_52 : f32 to vector<16x64xf32>
    %154 = arith.addf %153, %152 : vector<16x64xf32>
    %155 = arith.mulf %149, %154 : vector<16x64xf32>
    %156 = arith.mulf %155, %146 : vector<16x64xf32>
    %157 = arith.truncf %156 : vector<16x64xf32> to vector<16x64xbf16>
    %c0_53 = arith.constant 0 : index
    %c0_54 = arith.constant 0 : index
    %158 = vector.load %arg12[%c0_53, %c0_54] : memref<64x32xbf16, #tpu.memory_space<vmem>>, vector<64x32xbf16>
    %cst_55 = arith.constant dense<0.000000e+00> : vector<16x32xf32>
    %159 = tpu.matmul %157, %158, %cst_55 {dimension_numbers = #tpu.dot_dimension_numbers<[1], [0], [0], [1], [0, 0, 1, 1], [], []>} : vector<16x64xbf16>, vector<64x32xbf16>, vector<16x32xf32> -> vector<16x32xf32>
    %c0_56 = arith.constant 0 : index
    %c0_57 = arith.constant 0 : index
    %160 = vector.load %arg13[%c0_56, %c0_57] : memref<1x32xf32, #tpu.memory_space<vmem>>, vector<1x32xf32>
    %161 = vector.broadcast %160 : vector<1x32xf32> to vector<16x32xf32>
    %162 = arith.addf %159, %161 : vector<16x32xf32>
    %163 = arith.addf %110, %162 : vector<16x32xf32>
    %c0_58 = arith.constant 0 : index
    %c0_59 = arith.constant 0 : index
    %164 = vector.load %arg14[%c0_58, %c0_59] : memref<16x32xf32, #tpu.memory_space<vmem>>, vector<16x32xf32>
    tpu.vector_store %arg14[%c0_58, %c0_59], %163 {strides = array<i32>} : memref<16x32xf32, #tpu.memory_space<vmem>>, vector<16x32xf32>,
    return
  }
  func.func @transform_0(%arg0: i32) -> (i32, i32) {
    %c0_i32 = arith.constant 0 : i32
    %c0_i32_0 = arith.constant 0 : i32
    %c0_i32_1 = arith.constant 0 : i32
    return %c0_i32, %c0_i32_0 : i32, i32
  }
  func.func @transform_1(%arg0: i32) -> (i32, i32) {
    %c0_i32 = arith.constant 0 : i32
    %c0_i32_0 = arith.constant 0 : i32
    %c0_i32_1 = arith.constant 0 : i32
    return %c0_i32, %c0_i32_0 : i32, i32
  }
  func.func @transform_2(%arg0: i32) -> (i32, i32) {
    %c0_i32 = arith.constant 0 : i32
    %c0_i32_0 = arith.constant 0 : i32
    %c0_i32_1 = arith.constant 0 : i32
    return %c0_i32, %c0_i32_0 : i32, i32
  }
  func.func @transform_3(%arg0: i32) -> (i32, i32) {
    %c0_i32 = arith.constant 0 : i32
    %c0_i32_0 = arith.constant 0 : i32
    %c0_i32_1 = arith.constant 0 : i32
    return %c0_i32, %c0_i32_0 : i32, i32
  }
  func.func @transform_4(%arg0: i32) -> (i32, i32) {
    %c0_i32 = arith.constant 0 : i32
    %c0_i32_0 = arith.constant 0 : i32
    %c0_i32_1 = arith.constant 0 : i32
    return %c0_i32, %c0_i32_0 : i32, i32
  }
  func.func @transform_5(%arg0: i32) -> (i32, i32) {
    %c0_i32 = arith.constant 0 : i32
    %c0_i32_0 = arith.constant 0 : i32
    %c0_i32_1 = arith.constant 0 : i32
    return %c0_i32, %c0_i32_0 : i32, i32
  }
  func.func @transform_6(%arg0: i32) -> (i32, i32) {
    %c0_i32 = arith.constant 0 : i32
    %c0_i32_0 = arith.constant 0 : i32
    %c0_i32_1 = arith.constant 0 : i32
    return %c0_i32, %c0_i32_0 : i32, i32
  }
  func.func @transform_7(%arg0: i32) -> (i32, i32) {
    %c0_i32 = arith.constant 0 : i32
    %c0_i32_0 = arith.constant 0 : i32
    %c0_i32_1 = arith.constant 0 : i32
    return %c0_i32, %c0_i32_0 : i32, i32
  }
  func.func @transform_8(%arg0: i32) -> (i32, i32) {
    %c0_i32 = arith.constant 0 : i32
    %c0_i32_0 = arith.constant 0 : i32
    %c0_i32_1 = arith.constant 0 : i32
    return %c0_i32, %c0_i32_0 : i32, i32
  }
  func.func @transform_9(%arg0: i32) -> (i32, i32) {
    %c0_i32 = arith.constant 0 : i32
    %c0_i32_0 = arith.constant 0 : i32
    %c0_i32_1 = arith.constant 0 : i32
    return %c0_i32, %c0_i32_0 : i32, i32
  }
  func.func @transform_10(%arg0: i32) -> (i32, i32) {
    %c0_i32 = arith.constant 0 : i32
    %c0_i32_0 = arith.constant 0 : i32
    %c0_i32_1 = arith.constant 0 : i32
    return %c0_i32, %c0_i32_0 : i32, i32
  }
  func.func @transform_11(%arg0: i32) -> (i32, i32) {
    %c0_i32 = arith.constant 0 : i32
    %c0_i32_0 = arith.constant 0 : i32
    %c0_i32_1 = arith.constant 0 : i32
    return %c0_i32, %c0_i32_0 : i32, i32
  }
  func.func @transform_12(%arg0: i32) -> (i32, i32) {
    %c0_i32 = arith.constant 0 : i32
    %c0_i32_0 = arith.constant 0 : i32
    %c0_i32_1 = arith.constant 0 : i32
    return %c0_i32, %c0_i32_0 : i32, i32
  }
  func.func @transform_13(%arg0: i32) -> (i32, i32) {
    %c0_i32 = arith.constant 0 : i32
    %c0_i32_0 = arith.constant 0 : i32
    %c0_i32_1 = arith.constant 0 : i32
    return %c0_i32, %c0_i32_0 : i32, i32
  }
}

</mosaic_0001>

<bundles_post_ra>
// kernel: tpu_custom_call.1
= control target key start
LH: loop header
LB: loop body
LE: loop exit
PB: predicated region body
PF: predicated region fallthrough
CT: control target
= control target key end

     0   :  { %18 = vsyncpa [#allocation3], 0  ;;  %s2288_s0 = inlined_call_operand.vmem [shape: f32[16,32], index: 0, kind: input, shape index: {}]   ;;  %s2289_s1 = inlined_call_operand.vmem [shape: f32[1,32], index: 1, kind: input, shape index: {}]   ;;  %s2290_s2 = inlined_call_operand.vmem [shape: f32[1,32], index: 2, kind: input, shape index: {}]   ;;  %s2291_s3 = inlined_call_operand.vmem [shape: bf16[32,96], index: 3, kind: input, shape index: {}]   ;;  %s2292_s4 = inlined_call_operand.hbm [shape: f32[1,96], index: 4, kind: input, shape index: {}]   ;;  %s2293_s5 = inlined_call_operand.vmem [shape: bf16[32,32], index: 5, kind: input, shape index: {}]   ;;  %s2294_s6 = inlined_call_operand.hbm [shape: f32[1,32], index: 6, kind: input, shape index: {}]   ;;  %s2295_s7 = inlined_call_operand.hbm [shape: f32[1,32], index: 7, kind: input, shape index: {}]   ;;  %s2296_s8 = inlined_call_operand.hbm [shape: f32[1,32], index: 8, kind: input, shape index: {}]   ;;  %s2297_s9 = inlined_call_operand.vmem [shape: bf16[32,128], index: 9, kind: input, shape index: {}]   ;;  %s2298_s10 = inlined_call_operand.vmem [shape: f32[1,128], index: 10, kind: input, shape index: {}]   ;;  %s2299_s11 = inlined_call_operand.vmem [shape: bf16[64,32], index: 11, kind: input, shape index: {}]   ;;  %s2300_s12 = inlined_call_operand.vmem [shape: f32[1,32], index: 12, kind: input, shape index: {}]   ;;  %s2301_s13 = inlined_call_operand.hbm [shape: f32[16,32], index: 13, kind: output, shape index: {}]  }
   0x1   :  { %19 = vsyncpa [#allocation6], 0 }
   0x2   :  { %20 = vsyncpa [#allocation9], 0 }
   0x3   :  { %21 = vsyncpa [#allocation4], 0  ;;  %s1889_s25 = smov [#allocation5]   ;;  %s1890_s27 = smov [#allocation2]  }
   0x4   :  { %s48_s26 = sshll.u32 %s1889_s25, 4  ;;  %s36_s28 = sshll.u32 %s1890_s27, 4  ;;  %s49_s26 = int_to_ptr.vmem [resolvable:$true] %s48_s26  ;;  %s37_s28 = int_to_ptr.vmem [resolvable:$true] %s36_s28 }
   0x5   :  { %s1771_s14 = scalar_lea.hbm %s2294_s6, 16 }
   0x6   :  { %p1772_p0 = scmp.ne.s32.totalorder %s2294_s6, %s1771_s14  ;;  %p1775_p1 = scmp.lt.u32.totalorder %s1771_s14, %s2294_s6 }
   0x8   :  { %p1777_p2 = pnand %p1775_p1, %p1772_p0 }
   0xa   :  { %1780 = shalt.err (!%p1777_p2)
}
   0xb   :  { %s1781_s19 = scalar_lea.vmem %s49_s26, 16  ;;  %s1785_s20 = scalar_lea.vmem %s49_s26, 32 }
   0xc   :  { %p1782_p3 = scmp.ne.s32.totalorder %s49_s26, %s1781_s19  ;;  %p1786_p4 = scmp.lt.s32.totalorder %s49_s26, %s49_s26 }
   0xd   :  { %p1787_p5 = scmp.lt.s32.totalorder %s1785_s20, %s1781_s19 }
   0xf   :  { %p1788_p6 = por %p1787_p5, %p1786_p4 }
  0x11   :  { %p1789_p7 = pnand %p1788_p6, %p1782_p3 }
  0x13   :  { %1792 = shalt.err (!%p1789_p7)
}
  0x14   :  { %51 = dma.hbm_to_vmem [thread:$0]  %s2294_s6, 16, %s49_s26, [#allocation6]  }
  0x15   :  { %s1793_s25 = scalar_lea.hbm %s2292_s4, 16 }
  0x16   :  { %p1794_p8 = scmp.ne.s32.totalorder %s2292_s4, %s1793_s25  ;;  %p1797_p9 = scmp.lt.u32.totalorder %s1793_s25, %s2292_s4 }
  0x18   :  { %p1799_p10 = pnand %p1797_p9, %p1794_p8 }
  0x1a   :  { %1802 = shalt.err (!%p1799_p10)
}
  0x1b   :  { %s1803_s15 = scalar_lea.vmem %s37_s28, 16  ;;  %s1807_s16 = scalar_lea.vmem %s37_s28, 32 }
  0x1c   :  { %p1804_p11 = scmp.ne.s32.totalorder %s37_s28, %s1803_s15  ;;  %p1808_p12 = scmp.lt.s32.totalorder %s37_s28, %s37_s28 }
  0x1d   :  { %p1809_p13 = scmp.lt.s32.totalorder %s1807_s16, %s1803_s15 }
  0x1f   :  { %p1810_p0 = por %p1809_p13, %p1808_p12 }
  0x21   :  { %p1811_p1 = pnand %p1810_p0, %p1804_p11 }
  0x23   :  { %1814 = shalt.err (!%p1811_p1)
}
  0x24   :  { %39 = dma.hbm_to_vmem [thread:$0]  %s2292_s4, 16, %s37_s28, [#allocation3]  }
  0x25   :  { %s1891_s17 = smov [#allocation7]   ;;  %s1892_s19 = smov [#allocation8]  }
  0x26   :  { %s58_s18 = sshll.u32 %s1891_s17, 4  ;;  %s68_s20 = sshll.u32 %s1892_s19, 4  ;;  %s59_s18 = int_to_ptr.vmem [resolvable:$true] %s58_s18  ;;  %s69_s20 = int_to_ptr.vmem [resolvable:$true] %s68_s20 }
  0x27   :  { %s1815_s23 = scalar_lea.hbm %s2295_s7, 16 }
  0x28   :  { %p1816_p2 = scmp.ne.s32.totalorder %s2295_s7, %s1815_s23  ;;  %p1819_p3 = scmp.lt.u32.totalorder %s1815_s23, %s2295_s7 }
  0x2a   :  { %p1821_p4 = pnand %p1819_p3, %p1816_p2 }
  0x2c   :  { %1824 = shalt.err (!%p1821_p4)
}
  0x2d   :  { %s1825_s4 = scalar_lea.vmem %s59_s18, 16  ;;  %s1829_s28 = scalar_lea.vmem %s59_s18, 32 }
  0x2e   :  { %p1826_p5 = scmp.ne.s32.totalorder %s59_s18, %s1825_s4  ;;  %p1830_p6 = scmp.lt.s32.totalorder %s59_s18, %s59_s18 }
  0x2f   :  { %p1831_p7 = scmp.lt.s32.totalorder %s1829_s28, %s1825_s4 }
  0x31   :  { %p1832_p8 = por %p1831_p7, %p1830_p6 }
  0x33   :  { %p1833_p9 = pnand %p1832_p8, %p1826_p5 }
  0x35   :  { %1836 = shalt.err (!%p1833_p9)
}
  0x36   :  { %61 = dma.hbm_to_vmem [thread:$0]  %s2295_s7, 16, %s59_s18, [#allocation6]  }
  0x37   :  { %s1837_s6 = scalar_lea.hbm %s2296_s8, 16 }
  0x38   :  { %p1838_p10 = scmp.ne.s32.totalorder %s2296_s8, %s1837_s6  ;;  %p1841_p11 = scmp.lt.u32.totalorder %s1837_s6, %s2296_s8 }
  0x3a   :  { %p1843_p12 = pnand %p1841_p11, %p1838_p10 }
  0x3c   :  { %1846 = shalt.err (!%p1843_p12)
}
  0x3d   :  { %s1847_s22 = scalar_lea.vmem %s69_s20, 16  ;;  %s1851_s23 = scalar_lea.vmem %s69_s20, 32 }
  0x3e   :  { %p1848_p13 = scmp.ne.s32.totalorder %s69_s20, %s1847_s22  ;;  %p1852_p0 = scmp.lt.s32.totalorder %s69_s20, %s69_s20 }
  0x3f   :  { %p1853_p1 = scmp.lt.s32.totalorder %s1851_s23, %s1847_s22 }
  0x41   :  { %p1854_p2 = por %p1853_p1, %p1852_p0 }
  0x43   :  { %p1855_p3 = pnand %p1854_p2, %p1848_p13 }
  0x45   :  { %1858 = shalt.err (!%p1855_p3)
}
  0x46   :  { %71 = dma.hbm_to_vmem [thread:$0]  %s2296_s8, 16, %s69_s20, [#allocation9]  }
  0x47   :  { %1881 = dma.done.wait [#allocation3], 16  }
  0x48   :  { %1882 = vsyncadd [#allocation3], 4294967280 }
  0x49   :  { %1883 = dma.done.wait [#allocation6], 32  }
  0x4a   :  { %1884 = vsyncadd [#allocation6], 4294967264 }
  0x4b   :  { %1885 = dma.done.wait [#allocation9], 16  }
  0x4c   :  { %1886 = vsyncadd [#allocation9], 4294967280  ;;  %vm97_vm0 = vcmask 261120   ;;  %v2032_v0 = vld [vmem:[%s2288_s0] sm:$0xff]  ;;  %v2037_v1 = vld [vmem:[%s2288_s0 + $0x8] sm:$0xff]  ;;  %v1893_v15 = vmov 0.0  }
  0x4d   :  { %v98_v2 = vsel %vm97_vm0, %v2032_v0, 0.0  ;;  %v101_v3 = vsel %vm97_vm0, %v2037_v1, 0.0  ;;  %v1709_v14 = vld [vmem:[%s2291_s3] sm:$0xff]   ;;  %1540 = vmatprep.subr.bf16.mxu0 %v1893_v15  ;;  %1548 = vmatprep.subr.bf16.mxu1 %v1893_v15  ;;  %v1710_v16 = vld [vmem:[%s2291_s3 + $0x8] sm:$0xff]   ;;  %vm1894_vm1 = vmmov 0   ;;  %vm217_vm2 = vcmask 64512  }
  0x4e   :  { %99 = vadd.xlane.f32.xlu0 %v98_v2  ;;  %1541 = vmatpush3.bf16.msra.mxu0 %v1709_v14  ;;  %v1450_v25 = vld [vmem:[%s2289_s1] ss:$0 sm:$0xff]  ;;  %s1895_s1 = smov 96   ;;  %s1897_s15 = smov 88   ;;  %vm341_vm3 = vcmask 1043456   ;;  %vm1119_vm4 = vcmask 130048  }
  0x4f   :  { %1544 = vmatprep.mubr.msk.bf16.mxu0 %vm1894_vm1, %v1893_v15  ;;  %1542 = vmatprep.subr.bf16.mxu0 %v1893_v15  ;;  %v1451_v29 = vld [vmem:[%s2290_s2] ss:$0 sm:$0xff]  ;;  %s1896_s2 = smov 64   ;;  %s1898_s16 = smov 120   ;;  %vm1122_vm5 = vcmask 195584   ;;  %vm1382_vm6 = vcmask 523264  }
  0x50   :  { %1550 = vmatprep.mubr.msk.bf16.mxu1 %vm1894_vm1, %v1893_v15  ;;  %v1452_v34 = vld [vmem:[#allocation2] ss:$0 sm:$0xff]  ;;  %s1899_s6 = smov 56   ;;  %s1900_s26 = smov 80  }
  0x51   :  { %s1901_s17 = smov 112   ;;  %s1902_s19 = smov 48  }
  0x52   :  { %102 = vadd.xlane.f32.xlu0 %v101_v3  ;;  %1543 = vmatpush3.bf16.msra.mxu0 %v1710_v16  ;;  %s1903_s21 = smov 72   ;;  %s1904_s22 = smov 104  }
  0x53   :  { %1554 = vmatprep.subr.bf16.mxu0 %v1893_v15  ;;  %s1905_s23 = smov 40   ;;  %s1906_s7 = smov 8  }
  0x54   :  { %s1907_s18 = smov 16   ;;  %s1908_s0 = smov 24  }
  0xdb   :  { %v100_v4 = vpop.xlane.xlu0 %99 }
  0xdc   :  { %v105_v5 = vmul.f32 0.03125, %v100_v4 }
  0xde   :  { %v107_v6 = vsub.f32 %v2032_v0, %v105_v5 }
  0xdf   :  { %v103_v7 = vpop.xlane.xlu0 %102 }
  0xe0   :  { %v106_v8 = vmul.f32 0.03125, %v103_v7  ;;  %v109_v9 = vmul.f32 %v107_v6, %v107_v6 }
  0xe2   :  { %v108_v10 = vsub.f32 %v2037_v1, %v106_v8  ;;  %v111_v11 = vsel %vm97_vm0, %v109_v9, 0.0 }
  0xe3   :  { %112 = vadd.xlane.f32.xlu1 %v111_v11 }
  0xe4   :  { %v110_v12 = vmul.f32 %v108_v10, %v108_v10 }
  0xe6   :  { %v114_v13 = vsel %vm97_vm0, %v110_v12, 0.0 }
  0xe7   :  { %115 = vadd.xlane.f32.xlu1 %v114_v13 }
 0x170   :  { %v113_v17 = vpop.xlane.xlu1 %112 }
 0x171   :  { %v117_v18 = vmul.f32 0.03125, %v113_v17 }
 0x173   :  { %v119_v19 = vadd.f32 1e-05, %v117_v18 }
 0x174   :  { %v116_v20 = vpop.xlane.xlu1 %115 }
 0x175   :  { %1719 = vrsqrt.f32 %v119_v19  ;;  %v118_v21 = vmul.f32 0.03125, %v116_v20 }
 0x177   :  { %v120_v22 = vadd.f32 1e-05, %v118_v21 }
 0x179   :  { %1721 = vrsqrt.f32 %v120_v22 }
 0x17f   :  { %v1720_v23 = vpop.eup %1719 }
 0x180   :  { %v123_v24 = vmul.f32 %v1720_v23, %v107_v6 }
 0x182   :  { %v131_v28 = vmul.f32 %v1450_v25, %v123_v24 }
 0x183   :  { %v1722_v26 = vpop.eup %1721 }
 0x184   :  { %v124_v27 = vmul.f32 %v1722_v26, %v108_v10  ;;  %v139_v31 = vadd.f32 %v1451_v29, %v131_v28 }
 0x186   :  { %v132_v30 = vmul.f32 %v1450_v25, %v124_v27 }
 0x188   :  { %v140_v32 = vadd.f32 %v1451_v29, %v132_v30 }
 0x18a   :  { %v141_v33 = vpack.c.bf16 %v140_v32, %v139_v31 }
 0x18c   :  { %1545 = vmatmul.mubr.msk.bf16.vlgmr.msra.gmra.mrb[0].mxu0 %vm97_vm0, %v141_v33 }
 0x18d   :  { %1556 = vmatprep.mubr.msk.bf16.mxu0 %vm1894_vm1, %v1893_v15 }
 0x25f   :  { %v202_v35 = vpop.f32.mrb[0].mxu0 }
 0x260   :  { %v203_v36 = vadd.f32 %v1452_v34, %v202_v35  ;;  %v1546_v37 = vpop.f32.mrb[1].mxu0 }
 0x261   :  { %v205_v38 = vpop.f32.mrb[2].mxu0 }
 0x262   :  { %v2070_v39 = vpack.c.bf16 %v203_v36, %v203_v36  ;;  %v206_v40 = vadd.f32 %v1452_v34, %v205_v38  ;;  %v1547_v41 = vpop.f32.mrb[3].mxu0 }
 0x264   :  { %v2072_v42 = vpack.c.bf16 %v206_v40, %v206_v40  ;;  %215 = vrot.lane.b32.xlu0 %v2070_v39, %s1895_s1 }
 0x266   :  { %264 = vrot.lane.b32.xlu1 %v2072_v42, %s1895_s1 }
 0x2d6   :  { %v216_v43 = vpop.permute.xlu0 %215 }
 0x2d7   :  { %v222_v44 = vsel %vm217_vm2, %v216_v43, 0 }
 0x2d8   :  { %1549 = vmatpush3.bf16.xpose.msra.mxu1 %v222_v44  ;;  %v265_v45 = vpop.permute.xlu1 %264 }
 0x2d9   :  { %v270_v46 = vsel %vm217_vm2, %v265_v45, 0  ;;  %1560 = vmatprep.subr.bf16.mxu1 %v1893_v15 }
 0x2da   :  { %1555 = vmatpush3.bf16.xpose.msra.mxu0 %v270_v46 }
 0x2db   :  { %1566 = vmatprep.subr.bf16.mxu0 %v1893_v15 }
 0x2df   :  { %1551 = vmatmul.mubr.msk.bf16.vlgmr.msra.gmra.mrb[0].mxu1 %vm217_vm2, %v2070_v39 }
 0x2e0   :  { %1562 = vmatprep.mubr.msk.bf16.mxu1 %vm1894_vm1, %v1893_v15 }
 0x2e1   :  { %1557 = vmatmul.mubr.msk.bf16.vlgmr.msra.gmra.mrb[4].mxu0 %vm217_vm2, %v2072_v42 }
 0x2e2   :  { %1568 = vmatprep.mubr.msk.bf16.mxu0 %vm1894_vm1, %v1893_v15 }
 0x3b2   :  { %v258_v47 = vpop.f32.mrb[0].mxu1 }
 0x3b3   :  { %v1552_v48 = vpop.f32.mrb[1].mxu1  ;;  %v312_v49 = vsel %vm217_vm2, %v258_v47, -inf }
 0x3b4   :  { %v261_v50 = vpop.f32.mrb[2].mxu1  ;;  %313 = vmax.xlane.f32.xlu1 %v312_v49  ;;  %v306_v51 = vpop.f32.mrb[4].mxu0 }
 0x3b5   :  { %v1553_v52 = vpop.f32.mrb[3].mxu1  ;;  %v1558_v53 = vpop.f32.mrb[5].mxu0  ;;  %v315_v54 = vsel %vm217_vm2, %v306_v51, -inf }
 0x3b6   :  { %316 = vmax.xlane.f32.xlu0 %v315_v54  ;;  %v309_v55 = vpop.f32.mrb[6].mxu0 }
 0x3b7   :  { %v1559_v56 = vpop.f32.mrb[7].mxu0 }
 0x3c5   :  { %385 = vrot.lane.b32.xlu1 %v2072_v42, %s1896_s2 }
 0x3c9   :  { %435 = vrot.lane.b32.xlu1 %v2070_v39, %s1897_s15 }
 0x441   :  { %v314_v57 = vpop.xlane.xlu1 %313 }
 0x442   :  { %v318_v58 = vsub.f32 %v258_v47, %v314_v57 }
 0x443   :  { %v317_v59 = vpop.xlane.xlu0 %316 }
 0x444   :  { %v320_v60 = vmul.f32 1.442695, %v318_v58  ;;  %v319_v61 = vsub.f32 %v306_v51, %v317_v59 }
 0x445   :  { %v386_v62 = vpop.permute.xlu1 %385 }
 0x446   :  { %1723 = vpow2.f32 %v320_v60  ;;  %v322_v63 = vmul.f32 1.442695, %v319_v61  ;;  %v391_v2 = vsel %vm341_vm3, %v386_v62, 0 }
 0x447   :  { %1567 = vmatpush3.bf16.msra.mxu0 %v391_v2 }
 0x448   :  { %1725 = vpow2.f32 %v322_v63  ;;  %1578 = vmatprep.subr.bf16.mxu0 %v1893_v15 }
 0x449   :  { %v436_v7 = vpop.permute.xlu1 %435 }
 0x44a   :  { %v441_v19 = vsel %vm217_vm2, %v436_v7, 0 }
 0x450   :  { %v1724_v3 = vpop.eup %1723 }
 0x451   :  { %v324_v4 = vsel %vm217_vm2, %v1724_v3, 0.0 }
 0x452   :  { %v1726_v5 = vpop.eup %1725  ;;  %325 = vadd.xlane.f32.xlu0 %v324_v4 }
 0x453   :  { %v327_v6 = vsel %vm217_vm2, %v1726_v5, 0.0 }
 0x454   :  { %328 = vadd.xlane.f32.xlu1 %v327_v6 }
 0x465   :  { %485 = vrot.lane.b32.xlu1 %v2072_v42, %s1897_s15 }
 0x468   :  { %336 = vrot.lane.b32.xlu0 %v2070_v39, %s1896_s2 }
 0x469   :  { %483 = vrot.lane.b32.xlu1 %v2072_v42, %s1898_s16 }
 0x46c   :  { %433 = vrot.lane.b32.xlu0 %v2070_v39, %s1898_s16 }
 0x4df   :  { %v326_v8 = vpop.xlane.xlu0 %325 }
 0x4e0   :  { %1727 = vrcp.f32 %v326_v8 }
 0x4e1   :  { %v329_v9 = vpop.xlane.xlu1 %328 }
 0x4e2   :  { %1729 = vrcp.f32 %v329_v9 }
 0x4e3   :  { %v337_v10 = vpop.permute.xlu0 %336 }
 0x4e4   :  { %v343_v11 = vsel %vm341_vm3, %v337_v10, 0 }
 0x4e5   :  { %1561 = vmatpush3.bf16.msra.mxu1 %v343_v11  ;;  %v486_v18 = vpop.permute.xlu1 %485 }
 0x4e6   :  { %1572 = vmatprep.subr.bf16.mxu1 %v1893_v15  ;;  %v491_v21 = vsel %vm217_vm2, %v486_v18, 0 }
 0x4e7   :  { %v434_v22 = vpop.permute.xlu0 %433 }
 0x4e9   :  { %v484_v23 = vpop.permute.xlu1 %483 }
 0x4ea   :  { %v1728_v12 = vpop.eup %1727 }
 0x4eb   :  { %v332_v13 = vmul.f32 %v1728_v12, %v1724_v3 }
 0x4ec   :  { %v1730_v14 = vpop.eup %1729 }
 0x4ed   :  { %v333_v16 = vmul.f32 %v1730_v14, %v1726_v5  ;;  %v334_v17 = vpack.c.bf16 %v332_v13, %v332_v13 }
 0x4ef   :  { %1563 = vmatmul.mubr.msk.bf16.vlgmr.msra.gmra.mrb[4].mxu1 %vm217_vm2, %v334_v17  ;;  %v335_v20 = vpack.c.bf16 %v333_v16, %v333_v16 }
 0x4f0   :  { %1573 = vmatpush3.bf16.xpose.msra.mxu1 %v441_v19  ;;  %1574 = vmatprep.mubr.msk.bf16.mxu1 %vm1894_vm1, %v1893_v15 }
 0x4f1   :  { %1569 = vmatmul.mubr.msk.bf16.vlgmr.msra.gmra.mrb[8].mxu0 %vm217_vm2, %v335_v20  ;;  %1584 = vmatprep.subr.bf16.mxu1 %v1893_v15 }
 0x4f2   :  { %1579 = vmatpush3.bf16.xpose.msra.mxu0 %v491_v21  ;;  %1580 = vmatprep.mubr.msk.bf16.mxu0 %vm1894_vm1, %v1893_v15 }
 0x4f3   :  { %1590 = vmatprep.subr.bf16.mxu0 %v1893_v15 }
 0x4f7   :  { %1575 = vmatmul.mubr.msk.bf16.vlgmr.msra.gmra.mrb[8].mxu1 %vm217_vm2, %v434_v22 }
 0x4f8   :  { %1586 = vmatprep.mubr.msk.bf16.mxu1 %vm1894_vm1, %v1893_v15 }
 0x4f9   :  { %1581 = vmatmul.mubr.msk.bf16.vlgmr.msra.gmra.mrb[12].mxu0 %vm217_vm2, %v484_v23 }
 0x4fa   :  { %1592 = vmatprep.mubr.msk.bf16.mxu0 %vm1894_vm1, %v1893_v15 }
 0x5c2   :  { %v2120_v24 = vpop.f32.mrb[4].mxu1 }
 0x5c3   :  { %v1564_v25 = vpop.f32.mrb[5].mxu1 }
 0x5c4   :  { %v382_v26 = vpop.f32.mrb[6].mxu1  ;;  %v2122_v27 = vpop.f32.mrb[8].mxu0 }
 0x5c5   :  { %v1565_v28 = vpop.f32.mrb[7].mxu1  ;;  %v1570_v29 = vpop.f32.mrb[9].mxu0 }
 0x5c6   :  { %v430_v30 = vpop.f32.mrb[10].mxu0 }
 0x5c7   :  { %v1571_v31 = vpop.f32.mrb[11].mxu0 }
 0x5ca   :  { %v477_v32 = vpop.f32.mrb[8].mxu1 }
 0x5cb   :  { %v1576_v33 = vpop.f32.mrb[9].mxu1  ;;  %v533_v34 = vsel %vm217_vm2, %v477_v32, -inf }
 0x5cc   :  { %534 = vmax.xlane.f32.xlu0 %v533_v34  ;;  %v480_v35 = vpop.f32.mrb[10].mxu1  ;;  %v527_v36 = vpop.f32.mrb[12].mxu0 }
 0x5cd   :  { %v1577_v37 = vpop.f32.mrb[11].mxu1  ;;  %v1582_v38 = vpop.f32.mrb[13].mxu0  ;;  %v536_v40 = vsel %vm217_vm2, %v527_v36, -inf }
 0x5ce   :  { %537 = vmax.xlane.f32.xlu1 %v536_v40  ;;  %v530_v41 = vpop.f32.mrb[14].mxu0 }
 0x5cf   :  { %v1583_v43 = vpop.f32.mrb[15].mxu0 }
 0x5df   :  { %605 = vrot.lane.b32.xlu1 %v2072_v42, %s1899_s6 }
 0x5e3   :  { %655 = vrot.lane.b32.xlu1 %v2070_v39, %s1900_s26 }
 0x5e7   :  { %705 = vrot.lane.b32.xlu1 %v2072_v42, %s1900_s26 }
 0x5eb   :  { %703 = vrot.lane.b32.xlu1 %v2072_v42, %s1901_s17 }
 0x659   :  { %v535_v44 = vpop.xlane.xlu0 %534 }
 0x65a   :  { %v539_v45 = vsub.f32 %v477_v32, %v535_v44 }
 0x65b   :  { %v538_v46 = vpop.xlane.xlu1 %537 }
 0x65c   :  { %v541_v47 = vmul.f32 1.442695, %v539_v45  ;;  %v540_v48 = vsub.f32 %v527_v36, %v538_v46 }
 0x65e   :  { %1731 = vpow2.f32 %v541_v47  ;;  %v543_v49 = vmul.f32 1.442695, %v540_v48 }
 0x65f   :  { %v606_v50 = vpop.permute.xlu1 %605 }
 0x660   :  { %1733 = vpow2.f32 %v543_v49  ;;  %v611_v51 = vsel %vm341_vm3, %v606_v50, 0 }
 0x661   :  { %1591 = vmatpush3.bf16.msra.mxu0 %v611_v51 }
 0x662   :  { %1602 = vmatprep.subr.bf16.mxu0 %v1893_v15 }
 0x663   :  { %v656_v61 = vpop.permute.xlu1 %655 }
 0x664   :  { %v661_v5 = vsel %vm217_vm2, %v656_v61, 0 }
 0x667   :  { %v706_v4 = vpop.permute.xlu1 %705 }
 0x668   :  { %v1732_v52 = vpop.eup %1731  ;;  %v711_v7 = vsel %vm217_vm2, %v706_v4, 0 }
 0x669   :  { %v545_v53 = vsel %vm217_vm2, %v1732_v52, 0.0 }
 0x66a   :  { %v1734_v54 = vpop.eup %1733  ;;  %546 = vadd.xlane.f32.xlu0 %v545_v53 }
 0x66b   :  { %v548_v55 = vsel %vm217_vm2, %v1734_v54, 0.0  ;;  %v704_v9 = vpop.permute.xlu1 %703 }
 0x66e   :  { %549 = vadd.xlane.f32.xlu0 %v548_v55 }
 0x684   :  { %557 = vrot.lane.b32.xlu0 %v2070_v39, %s1899_s6 }
 0x688   :  { %653 = vrot.lane.b32.xlu0 %v2070_v39, %s1901_s17  ;;  %s1909_s17 = smov [#allocation10]  }
 0x6f7   :  { %v547_v56 = vpop.xlane.xlu0 %546 }
 0x6f8   :  { %1735 = vrcp.f32 %v547_v56 }
 0x6fb   :  { %v550_v57 = vpop.xlane.xlu0 %549 }
 0x6fc   :  { %1737 = vrcp.f32 %v550_v57 }
 0x6ff   :  { %v558_v58 = vpop.permute.xlu0 %557 }
 0x700   :  { %v563_v59 = vsel %vm341_vm3, %v558_v58, 0 }
 0x701   :  { %1585 = vmatpush3.bf16.msra.mxu1 %v563_v59 }
 0x702   :  { %v1736_v60 = vpop.eup %1735  ;;  %1596 = vmatprep.subr.bf16.mxu1 %v1893_v15 }
 0x703   :  { %v553_v62 = vmul.f32 %v1736_v60, %v1732_v52  ;;  %v654_v8 = vpop.permute.xlu0 %653 }
 0x705   :  { %v555_v63 = vpack.c.bf16 %v553_v62, %v553_v62 }
 0x706   :  { %v1738_v2 = vpop.eup %1737 }
 0x707   :  { %v554_v3 = vmul.f32 %v1738_v2, %v1734_v54  ;;  %1587 = vmatmul.mubr.msk.bf16.vlgmr.msra.gmra.mrb[12].mxu1 %vm217_vm2, %v555_v63 }
 0x708   :  { %1598 = vmatprep.mubr.msk.bf16.mxu1 %vm1894_vm1, %v1893_v15 }
 0x709   :  { %v556_v6 = vpack.c.bf16 %v554_v3, %v554_v3 }
 0x70a   :  { %1597 = vmatpush3.bf16.xpose.msra.mxu1 %v661_v5 }
 0x70b   :  { %1593 = vmatmul.mubr.msk.bf16.vlgmr.msra.gmra.mrb[16].mxu0 %vm217_vm2, %v556_v6  ;;  %1608 = vmatprep.subr.bf16.mxu1 %v1893_v15 }
 0x70c   :  { %1603 = vmatpush3.bf16.xpose.msra.mxu0 %v711_v7  ;;  %1604 = vmatprep.mubr.msk.bf16.mxu0 %vm1894_vm1, %v1893_v15 }
 0x70d   :  { %1614 = vmatprep.subr.bf16.mxu0 %v1893_v15 }
 0x711   :  { %1599 = vmatmul.mubr.msk.bf16.vlgmr.msra.gmra.mrb[16].mxu1 %vm217_vm2, %v654_v8 }
 0x712   :  { %1610 = vmatprep.mubr.msk.bf16.mxu1 %vm1894_vm1, %v1893_v15 }
 0x713   :  { %1605 = vmatmul.mubr.msk.bf16.vlgmr.msra.gmra.mrb[20].mxu0 %vm217_vm2, %v704_v9 }
 0x714   :  { %1616 = vmatprep.mubr.msk.bf16.mxu0 %vm1894_vm1, %v1893_v15 }
 0x7da   :  { %v2154_v10 = vpop.f32.mrb[12].mxu1 }
 0x7db   :  { %v1588_v11 = vpop.f32.mrb[13].mxu1 }
 0x7dc   :  { %v602_v12 = vpop.f32.mrb[14].mxu1 }
 0x7dd   :  { %v1589_v13 = vpop.f32.mrb[15].mxu1 }
 0x7de   :  { %v2156_v14 = vpop.f32.mrb[16].mxu0 }
 0x7df   :  { %v1694_v16 = vpack.i.bf16 %v2156_v14, %v2154_v10  ;;  %v1594_v17 = vpop.f32.mrb[17].mxu0 }
 0x7e0   :  { %v650_v18 = vpop.f32.mrb[18].mxu0 }
 0x7e1   :  { %v1595_v19 = vpop.f32.mrb[19].mxu0 }
 0x7e4   :  { %v697_v20 = vpop.f32.mrb[16].mxu1 }
 0x7e5   :  { %v1600_v21 = vpop.f32.mrb[17].mxu1  ;;  %v753_v22 = vsel %vm217_vm2, %v697_v20, -inf }
 0x7e6   :  { %754 = vmax.xlane.f32.xlu0 %v753_v22  ;;  %v700_v23 = vpop.f32.mrb[18].mxu1  ;;  %v747_v25 = vpop.f32.mrb[20].mxu0 }
 0x7e7   :  { %v1601_v26 = vpop.f32.mrb[19].mxu1  ;;  %v1606_v28 = vpop.f32.mrb[21].mxu0  ;;  %v756_v29 = vsel %vm217_vm2, %v747_v25, -inf }
 0x7e8   :  { %757 = vmax.xlane.f32.xlu1 %v756_v29  ;;  %v750_v30 = vpop.f32.mrb[22].mxu0 }
 0x7e9   :  { %v1607_v31 = vpop.f32.mrb[23].mxu0 }
 0x7f9   :  { %825 = vrot.lane.b32.xlu1 %v2072_v42, %s1902_s19 }
 0x7fd   :  { %875 = vrot.lane.b32.xlu1 %v2070_v39, %s1903_s21 }
 0x801   :  { %925 = vrot.lane.b32.xlu1 %v2072_v42, %s1903_s21 }
 0x805   :  { %923 = vrot.lane.b32.xlu1 %v2072_v42, %s1904_s22 }
 0x873   :  { %v755_v32 = vpop.xlane.xlu0 %754 }
 0x874   :  { %v759_v33 = vsub.f32 %v697_v20, %v755_v32 }
 0x875   :  { %v758_v34 = vpop.xlane.xlu1 %757 }
 0x876   :  { %v761_v35 = vmul.f32 1.442695, %v759_v33  ;;  %v760_v36 = vsub.f32 %v747_v25, %v758_v34 }
 0x878   :  { %1739 = vpow2.f32 %v761_v35  ;;  %v763_v37 = vmul.f32 1.442695, %v760_v36 }
 0x879   :  { %v826_v38 = vpop.permute.xlu1 %825 }
 0x87a   :  { %1741 = vpow2.f32 %v763_v37  ;;  %v831_v40 = vsel %vm341_vm3, %v826_v38, 0 }
 0x87b   :  { %1615 = vmatpush3.bf16.msra.mxu0 %v831_v40 }
 0x87c   :  { %1626 = vmatprep.subr.bf16.mxu0 %v1893_v15 }
 0x87d   :  { %v876_v51 = vpop.permute.xlu1 %875 }
 0x87e   :  { %v881_v57 = vsel %vm217_vm2, %v876_v51, 0 }
 0x881   :  { %v926_v56 = vpop.permute.xlu1 %925 }
 0x882   :  { %v1740_v41 = vpop.eup %1739  ;;  %v931_v59 = vsel %vm217_vm2, %v926_v56, 0 }
 0x883   :  { %v765_v43 = vsel %vm217_vm2, %v1740_v41, 0.0 }
 0x884   :  { %v1742_v44 = vpop.eup %1741  ;;  %766 = vadd.xlane.f32.xlu0 %v765_v43 }
 0x885   :  { %v768_v45 = vsel %vm217_vm2, %v1742_v44, 0.0  ;;  %v924_v61 = vpop.permute.xlu1 %923 }
 0x888   :  { %769 = vadd.xlane.f32.xlu0 %v768_v45  ;;  %v1712_v45 = vld [vmem:[%s2293_s5 + $0x8] sm:$0xff]  }
 0x89e   :  { %777 = vrot.lane.b32.xlu0 %v2070_v39, %s1902_s19  ;;  %s1436_s19 = sshll.u32 %s1909_s17, 4  ;;  %s1437_s19 = int_to_ptr.vmem [resolvable:$true] %s1436_s19 }
 0x89f   :  { %p1864_p5 = scmp.lt.s32.totalorder %s1437_s19, %s1437_s19 }
 0x8a2   :  { %873 = vrot.lane.b32.xlu0 %v2070_v39, %s1904_s22 }
 0x911   :  { %v767_v46 = vpop.xlane.xlu0 %766 }
 0x912   :  { %1743 = vrcp.f32 %v767_v46 }
 0x915   :  { %v770_v47 = vpop.xlane.xlu0 %769 }
 0x916   :  { %1745 = vrcp.f32 %v770_v47 }
 0x919   :  { %v778_v48 = vpop.permute.xlu0 %777 }
 0x91a   :  { %v783_v49 = vsel %vm341_vm3, %v778_v48, 0 }
 0x91b   :  { %1609 = vmatpush3.bf16.msra.mxu1 %v783_v49 }
 0x91c   :  { %v1744_v50 = vpop.eup %1743  ;;  %1620 = vmatprep.subr.bf16.mxu1 %v1893_v15 }
 0x91d   :  { %v773_v52 = vmul.f32 %v1744_v50, %v1740_v41  ;;  %v874_v60 = vpop.permute.xlu0 %873 }
 0x91f   :  { %v775_v53 = vpack.c.bf16 %v773_v52, %v773_v52 }
 0x920   :  { %v1746_v54 = vpop.eup %1745 }
 0x921   :  { %v774_v55 = vmul.f32 %v1746_v54, %v1742_v44  ;;  %1611 = vmatmul.mubr.msk.bf16.vlgmr.msra.gmra.mrb[20].mxu1 %vm217_vm2, %v775_v53  ;;  %v1711_v44 = vld [vmem:[%s2293_s5] sm:$0xff]  }
 0x922   :  { %1622 = vmatprep.mubr.msk.bf16.mxu1 %vm1894_vm1, %v1893_v15 }
 0x923   :  { %v776_v58 = vpack.c.bf16 %v774_v55, %v774_v55 }
 0x924   :  { %1621 = vmatpush3.bf16.xpose.msra.mxu1 %v881_v57 }
 0x925   :  { %1617 = vmatmul.mubr.msk.bf16.vlgmr.msra.gmra.mrb[24].mxu0 %vm217_vm2, %v776_v58  ;;  %1632 = vmatprep.subr.bf16.mxu1 %v1893_v15 }
 0x926   :  { %1627 = vmatpush3.bf16.xpose.msra.mxu0 %v931_v59  ;;  %1628 = vmatprep.mubr.msk.bf16.mxu0 %vm1894_vm1, %v1893_v15 }
 0x927   :  { %1638 = vmatprep.subr.bf16.mxu0 %v1893_v15 }
 0x92b   :  { %1623 = vmatmul.mubr.msk.bf16.vlgmr.msra.gmra.mrb[24].mxu1 %vm217_vm2, %v874_v60 }
 0x92c   :  { %1634 = vmatprep.mubr.msk.bf16.mxu1 %vm1894_vm1, %v1893_v15 }
 0x92d   :  { %1629 = vmatmul.mubr.msk.bf16.vlgmr.msra.gmra.mrb[28].mxu0 %vm217_vm2, %v924_v61 }
 0x92e   :  { %1640 = vmatprep.mubr.msk.bf16.mxu0 %vm1894_vm1, %v1893_v15 }
 0x9f4   :  { %v819_v62 = vpop.f32.mrb[20].mxu1 }
 0x9f5   :  { %v1612_v63 = vpop.f32.mrb[21].mxu1 }
 0x9f6   :  { %v822_v2 = vpop.f32.mrb[22].mxu1 }
 0x9f7   :  { %v1613_v3 = vpop.f32.mrb[23].mxu1 }
 0x9f8   :  { %v867_v4 = vpop.f32.mrb[24].mxu0 }
 0x9f9   :  { %v1699_v5 = vpack.i.bf16 %v867_v4, %v819_v62  ;;  %v1618_v6 = vpop.f32.mrb[25].mxu0 }
 0x9fa   :  { %v870_v7 = vpop.f32.mrb[26].mxu0 }
 0x9fb   :  { %v1619_v8 = vpop.f32.mrb[27].mxu0 }
 0x9fe   :  { %v917_v9 = vpop.f32.mrb[24].mxu1 }
 0x9ff   :  { %v1624_v11 = vpop.f32.mrb[25].mxu1  ;;  %v973_v12 = vsel %vm217_vm2, %v917_v9, -inf }
 0xa00   :  { %974 = vmax.xlane.f32.xlu0 %v973_v12  ;;  %v920_v13 = vpop.f32.mrb[26].mxu1  ;;  %v967_v17 = vpop.f32.mrb[28].mxu0 }
 0xa01   :  { %v1625_v18 = vpop.f32.mrb[27].mxu1  ;;  %v1630_v19 = vpop.f32.mrb[29].mxu0  ;;  %v976_v20 = vsel %vm217_vm2, %v967_v17, -inf }
 0xa02   :  { %977 = vmax.xlane.f32.xlu1 %v976_v20  ;;  %v970_v21 = vpop.f32.mrb[30].mxu0 }
 0xa03   :  { %v1631_v22 = vpop.f32.mrb[31].mxu0 }
 0xa13   :  { %1045 = vrot.lane.b32.xlu1 %v2072_v42, %s1905_s23 }
 0xa17   :  { %1695 = vrot.lane.b32.xlu1 %v1694_v16, %s1906_s7 }
 0xa1b   :  { %1700 = vrot.lane.b32.xlu1 %v1699_v5, %s1907_s18 }
 0xa8d   :  { %v975_v23 = vpop.xlane.xlu0 %974 }
 0xa8e   :  { %v979_v25 = vsub.f32 %v917_v9, %v975_v23  ;;  %v1474_v9 = vld [vmem:[#allocation5] ss:$0 sm:$0xff] }
 0xa8f   :  { %v978_v26 = vpop.xlane.xlu1 %977 }
 0xa90   :  { %v981_v28 = vmul.f32 1.442695, %v979_v25  ;;  %v980_v29 = vsub.f32 %v967_v17, %v978_v26 }
 0xa92   :  { %1747 = vpow2.f32 %v981_v28  ;;  %v983_v30 = vmul.f32 1.442695, %v980_v29 }
 0xa93   :  { %v1046_v31 = vpop.permute.xlu1 %1045 }
 0xa94   :  { %1749 = vpow2.f32 %v983_v30  ;;  %v1051_v32 = vsel %vm341_vm3, %v1046_v31, 0 }
 0xa95   :  { %1639 = vmatpush3.bf16.msra.mxu0 %v1051_v32  ;;  %v1713_v32 = vld [vmem:[%s2297_s9] sm:$0xff]  }
 0xa96   :  { %1652 = vmatprep.subr.bf16.mxu0 %v1893_v15 }
 0xa97   :  { %v1696_v55 = vpop.permute.xlu1 %1695 }
 0xa98   :  { %v1698_v57 = vunpack.i.h.bf16 %v1696_v55  ;;  %v1697_v58 = vunpack.i.l.bf16 %v1696_v55 }
 0xa9a   :  { %v1118_v62 = vsel %vm217_vm2, %v2122_v27, %v1698_v57  ;;  %v1117_v63 = vsel %vm217_vm2, %v2120_v24, %v1697_v58 }
 0xa9b   :  { %v1701_v56 = vpop.permute.xlu1 %1700 }
 0xa9c   :  { %v1748_v42 = vpop.eup %1747  ;;  %v1703_v59 = vunpack.i.h.bf16 %v1701_v56  ;;  %v1702_v60 = vunpack.i.l.bf16 %v1701_v56 }
 0xa9d   :  { %v985_v10 = vsel %vm217_vm2, %v1748_v42, 0.0 }
 0xa9e   :  { %v1750_v14 = vpop.eup %1749  ;;  %986 = vadd.xlane.f32.xlu0 %v985_v10  ;;  %v1120_v4 = vsel %vm1119_vm4, %v1117_v63, %v1702_v60  ;;  %v1121_v5 = vsel %vm1119_vm4, %v1118_v62, %v1703_v59  ;;  %v1716_v62 = vld [vmem:[%s2299_s11 + $0x8] sm:$0xff]  }
 0xa9f   :  { %v988_v16 = vsel %vm217_vm2, %v1750_v14, 0.0 }
 0xaa2   :  { %989 = vadd.xlane.f32.xlu0 %v988_v16 }
 0xab8   :  { %997 = vrot.lane.b32.xlu0 %v2070_v39, %s1905_s23 }
 0xb2b   :  { %v987_v33 = vpop.xlane.xlu0 %986 }
 0xb2c   :  { %1751 = vrcp.f32 %v987_v33 }
 0xb2f   :  { %v990_v34 = vpop.xlane.xlu0 %989 }
 0xb30   :  { %1753 = vrcp.f32 %v990_v34 }
 0xb33   :  { %v998_v35 = vpop.permute.xlu0 %997 }
 0xb34   :  { %v1003_v36 = vsel %vm341_vm3, %v998_v35, 0 }
 0xb35   :  { %1633 = vmatpush3.bf16.msra.mxu1 %v1003_v36 }
 0xb36   :  { %v1752_v37 = vpop.eup %1751  ;;  %1644 = vmatprep.subr.bf16.mxu1 %v1893_v15 }
 0xb37   :  { %v993_v38 = vmul.f32 %v1752_v37, %v1748_v42  ;;  %v1714_v42 = vld [vmem:[%s2297_s9 + $0x8] sm:$0xff]  }
 0xb39   :  { %v995_v40 = vpack.c.bf16 %v993_v38, %v993_v38  ;;  %v1478_v38 = vld [vmem:[#allocation7] ss:$0 sm:$0xff] }
 0xb3a   :  { %v1754_v41 = vpop.eup %1753 }
 0xb3b   :  { %v994_v43 = vmul.f32 %v1754_v41, %v1750_v14  ;;  %1635 = vmatmul.mubr.msk.bf16.vlgmr.msra.gmra.mrb[28].mxu1 %vm217_vm2, %v995_v40 }
 0xb3c   :  { %1648 = vmatprep.mubr.msk.bf16.mxu1 %vm1894_vm1, %v1893_v15  ;;  %1645 = vmatpush3.bf16.msra.mxu1 %v1711_v44 }
 0xb3d   :  { %v996_v39 = vpack.c.bf16 %v994_v43, %v994_v43  ;;  %1646 = vmatprep.subr.bf16.mxu1 %v1893_v15 }
 0xb3f   :  { %1641 = vmatmul.mubr.msk.bf16.vlgmr.msra.gmra.mrb[32].mxu0 %vm217_vm2, %v996_v39  ;;  %v1479_v39 = vld [vmem:[#allocation8] ss:$0 sm:$0xff] }
 0xb40   :  { %1656 = vmatprep.mubr.msk.bf16.mxu0 %vm1894_vm1, %v1893_v15  ;;  %1647 = vmatpush3.bf16.msra.mxu1 %v1712_v45 }
 0xb41   :  { %1660 = vmatprep.subr.bf16.mxu1 %v1893_v15  ;;  %1653 = vmatpush3.bf16.msra.mxu0 %v1713_v32 }
 0xb42   :  { %1654 = vmatprep.subr.bf16.mxu0 %v1893_v15 }
 0xb45   :  { %1655 = vmatpush3.bf16.msra.mxu0 %v1714_v42 }
 0xc0e   :  { %v1039_v46 = vpop.f32.mrb[28].mxu1 }
 0xc0f   :  { %v1636_v47 = vpop.f32.mrb[29].mxu1 }
 0xc10   :  { %v1042_v48 = vpop.f32.mrb[30].mxu1 }
 0xc11   :  { %v1637_v49 = vpop.f32.mrb[31].mxu1  ;;  %v1480_v48 = vld [vmem:[%s2298_s10] ss:$0 sm:$0xff] }
 0xc12   :  { %v1087_v50 = vpop.f32.mrb[32].mxu0 }
 0xc13   :  { %v1704_v51 = vpack.i.bf16 %v1087_v50, %v1039_v46  ;;  %v1642_v52 = vpop.f32.mrb[33].mxu0 }
 0xc14   :  { %v1090_v53 = vpop.f32.mrb[34].mxu0 }
 0xc15   :  { %1705 = vrot.lane.b32.xlu0 %v1704_v51, %s1908_s0  ;;  %v1643_v54 = vpop.f32.mrb[35].mxu0 }
 0xc87   :  { %v1706_v61 = vpop.permute.xlu0 %1705 }
 0xc88   :  { %v1708_v2 = vunpack.i.h.bf16 %v1706_v61  ;;  %v1707_v3 = vunpack.i.l.bf16 %v1706_v61  ;;  %v1715_v61 = vld [vmem:[%s2299_s11] sm:$0xff]  }
 0xc8a   :  { %v1124_v6 = vsel %vm1122_vm5, %v1121_v5, %v1708_v2  ;;  %v1123_v7 = vsel %vm1122_vm5, %v1120_v4, %v1707_v3  ;;  %v1717_v2 = vld [vmem:[%s2299_s11 + $0x10] sm:$0xff]   ;;  %v1718_v4 = vld [vmem:[%s2299_s11 + $0x18] sm:$0xff]  }
 0xc8b   :  { %v1125_v8 = vpack.c.bf16 %v1124_v6, %v1123_v7 }
 0xc8d   :  { %1649 = vmatmul.mubr.msk.bf16.vlgmr.msra.gmra.mrb[32].mxu1 %vm97_vm0, %v1125_v8 }
 0xc8e   :  { %1668 = vmatprep.mubr.msk.bf16.mxu1 %vm1894_vm1, %v1893_v15  ;;  %1661 = vmatpush3.bf16.msra.mxu1 %v1715_v61 }
 0xc8f   :  { %1662 = vmatprep.subr.bf16.mxu1 %v1893_v15 }
 0xc92   :  { %1663 = vmatpush3.bf16.msra.mxu1 %v1716_v62 }
 0xc93   :  { %1664 = vmatprep.subr.bf16.mxu1 %v1893_v15 }
 0xc96   :  { %1665 = vmatpush3.bf16.msra.mxu1 %v1717_v2 }
 0xc97   :  { %1666 = vmatprep.subr.bf16.mxu1 %v1893_v15 }
 0xc9a   :  { %1667 = vmatpush3.bf16.msra.mxu1 %v1718_v4 }
 0xd60   :  { %v1186_v11 = vpop.f32.mrb[32].mxu1 }
 0xd61   :  { %v1187_v12 = vadd.f32 %v1474_v9, %v1186_v11  ;;  %v1650_v13 = vpop.f32.mrb[33].mxu1 }
 0xd62   :  { %v1189_v27 = vpop.f32.mrb[34].mxu1 }
 0xd63   :  { %v2226_v17 = vadd.f32 %v1187_v12, %v2032_v0  ;;  %v1190_v24 = vadd.f32 %v1474_v9, %v1189_v27  ;;  %v1651_v18 = vpop.f32.mrb[35].mxu1 }
 0xd65   :  { %v2229_v19 = vadd.f32 %v1190_v24, %v2037_v1  ;;  %v1197_v20 = vsel %vm97_vm0, %v2226_v17, 0.0 }
 0xd66   :  { %1198 = vadd.xlane.f32.xlu1 %v1197_v20 }
 0xd67   :  { %v1200_v21 = vsel %vm97_vm0, %v2229_v19, 0.0 }
 0xd68   :  { %1201 = vadd.xlane.f32.xlu0 %v1200_v21 }
 0xdf3   :  { %v1199_v22 = vpop.xlane.xlu1 %1198 }
 0xdf4   :  { %v1203_v23 = vmul.f32 0.03125, %v1199_v22 }
 0xdf5   :  { %v1202_v25 = vpop.xlane.xlu0 %1201 }
 0xdf6   :  { %v1205_v26 = vsub.f32 %v2226_v17, %v1203_v23  ;;  %v1204_v0 = vmul.f32 0.03125, %v1202_v25  ;;  %v1486_v25 = vld [vmem:[%s2300_s12] ss:$0 sm:$0xff] }
 0xdf8   :  { %v1206_v28 = vsub.f32 %v2229_v19, %v1204_v0  ;;  %v1207_v29 = vmul.f32 %v1205_v26, %v1205_v26 }
 0xdfa   :  { %v1209_v1 = vsel %vm97_vm0, %v1207_v29, 0.0  ;;  %v1208_v30 = vmul.f32 %v1206_v28, %v1206_v28 }
 0xdfb   :  { %1210 = vadd.xlane.f32.xlu0 %v1209_v1 }
 0xdfc   :  { %v1212_v31 = vsel %vm97_vm0, %v1208_v30, 0.0 }
 0xdff   :  { %1213 = vadd.xlane.f32.xlu0 %v1212_v31 }
 0xe88   :  { %v1211_v10 = vpop.xlane.xlu0 %1210 }
 0xe89   :  { %v1215_v14 = vmul.f32 0.03125, %v1211_v10 }
 0xe8b   :  { %v1217_v16 = vadd.f32 1e-05, %v1215_v14 }
 0xe8c   :  { %v1214_v33 = vpop.xlane.xlu0 %1213 }
 0xe8d   :  { %1755 = vrsqrt.f32 %v1217_v16  ;;  %v1216_v34 = vmul.f32 0.03125, %v1214_v33 }
 0xe8f   :  { %v1218_v35 = vadd.f32 1e-05, %v1216_v34 }
 0xe91   :  { %1757 = vrsqrt.f32 %v1218_v35 }
 0xe97   :  { %v1756_v36 = vpop.eup %1755 }
 0xe98   :  { %v1221_v37 = vmul.f32 %v1756_v36, %v1205_v26 }
 0xe9a   :  { %v1229_v41 = vmul.f32 %v1478_v38, %v1221_v37 }
 0xe9b   :  { %v1758_v40 = vpop.eup %1757 }
 0xe9c   :  { %v1222_v43 = vmul.f32 %v1758_v40, %v1206_v28  ;;  %v1237_v45 = vadd.f32 %v1479_v39, %v1229_v41 }
 0xe9e   :  { %v1230_v44 = vmul.f32 %v1478_v38, %v1222_v43 }
 0xea0   :  { %v1238_v46 = vadd.f32 %v1479_v39, %v1230_v44 }
 0xea2   :  { %v1239_v47 = vpack.c.bf16 %v1238_v46, %v1237_v45 }
 0xea4   :  { %1657 = vmatmul.mubr.msk.bf16.vlgmr.msra.gmra.mrb[36].mxu0 %vm97_vm0, %v1239_v47 }
 0xf77   :  { %v1300_v49 = vpop.f32.mrb[36].mxu0 }
 0xf78   :  { %v1301_v50 = vadd.f32 %v1480_v48, %v1300_v49  ;;  %v1658_v51 = vpop.f32.mrb[37].mxu0 }
 0xf79   :  { %v1303_v52 = vpop.f32.mrb[38].mxu0 }
 0xf7a   :  { %v1484_v53 = vmul.f32 -1.442695, %v1301_v50  ;;  %v1304_v54 = vadd.f32 %v1480_v48, %v1303_v52  ;;  %v1659_v55 = vpop.f32.mrb[39].mxu0  ;;  %v1321_v5 = vmul.f32 0.70710677, %v1301_v50  ;;  %v1319_v12 = vmul.f32 0.5, %v1301_v50 }
 0xf7c   :  { %1759 = vpow2.f32 %v1484_v53  ;;  %v1485_v56 = vmul.f32 -1.442695, %v1304_v54  ;;  %v1322_v6 = vmul.f32 0.70710677, %v1304_v54  ;;  %v1320_v13 = vmul.f32 0.5, %v1304_v54 }
 0xf7e   :  { %1761 = vpow2.f32 %v1485_v56 }
 0xf86   :  { %v1760_v57 = vpop.eup %1759 }
 0xf87   :  { %v1313_v58 = vadd.f32 1.0, %v1760_v57 }
 0xf88   :  { %v1762_v59 = vpop.eup %1761 }
 0xf89   :  { %1763 = vrcp.f32 %v1313_v58  ;;  %v1314_v60 = vadd.f32 1.0, %v1762_v59 }
 0xf8b   :  { %1765 = vrcp.f32 %v1314_v60 }
 0xf8c   :  { %1767 = verf.f32 %v1321_v5 }
 0xf8d   :  { %1769 = verf.f32 %v1322_v6 }
 0xf93   :  { %v1764_v63 = vpop.eup %1763 }
 0xf94   :  { %1331 = vrot.lane.b32.xlu1 %v1764_v63, %s1896_s2 }
 0xf95   :  { %v1766_v3 = vpop.eup %1765 }
 0xf96   :  { %1333 = vrot.lane.b32.xlu0 %v1766_v3, %s1896_s2  ;;  %v1768_v7 = vpop.eup %1767 }
 0xf97   :  { %v1770_v8 = vpop.eup %1769  ;;  %v1325_v9 = vadd.f32 1.0, %v1768_v7 }
 0xf98   :  { %v1326_v11 = vadd.f32 1.0, %v1770_v8 }
 0xf99   :  { %v1327_v24 = vmul.f32 %v1325_v9, %v1319_v12 }
 0xf9a   :  { %v1328_v18 = vmul.f32 %v1326_v11, %v1320_v13 }
0x1006   :  { %v1332_v27 = vpop.permute.xlu1 %1331 }
0x1007   :  { %v1337_v21 = vmul.f32 %v1332_v27, %v1327_v24 }
0x1008   :  { %v1334_v20 = vpop.permute.xlu0 %1333 }
0x1009   :  { %v1338_v22 = vmul.f32 %v1334_v20, %v1328_v18 }
0x100b   :  { %v1339_v23 = vpack.c.bf16 %v1338_v22, %v1337_v21 }
0x100d   :  { %1356 = vrot.lane.b32.xlu1 %v1339_v23, %s1896_s2  ;;  %s1859_s2 = scalar_lea.vmem %s1437_s19, 256 }
0x100e   :  { %p1860_p4 = scmp.ne.s32.totalorder %s1437_s19, %s1859_s2  ;;  %p1865_p6 = scmp.lt.s32.totalorder %s1859_s2, %s1859_s2 }
0x1010   :  { %p1866_p7 = por %p1865_p6, %p1864_p5 }
0x1012   :  { %p1867_p8 = pnand %p1866_p7, %p1860_p4 }
0x107f   :  { %v1357_v15 = vpop.permute.xlu1 %1356 }
0x1080   :  { %1669 = vmatmul.mubr.msk.bf16.vlgmr.msra.gmra.mrb[36].mxu1 %vm1382_vm6, %v1357_v15 }
0x1153   :  { %v1420_v26 = vpop.f32.mrb[36].mxu1 }
0x1154   :  { %v1421_v0 = vadd.f32 %v1486_v25, %v1420_v26  ;;  %v1670_v28 = vpop.f32.mrb[37].mxu1 }
0x1155   :  { %v1423_v29 = vpop.f32.mrb[38].mxu1 }
0x1156   :  { %v1427_v1 = vadd.f32 %v1421_v0, %v2226_v17  ;;  %v1424_v30 = vadd.f32 %v1486_v25, %v1423_v29  ;;  %v1671_v31 = vpop.f32.mrb[39].mxu1 }
0x1158   :  { %1429 = vst.msk [vmem:[#allocation10] sm:$0xff] %vm97_vm0, %v1427_v1  ;;  %v1428_v32 = vadd.f32 %v1424_v30, %v2229_v19 }
0x115a   :  { %1430 = vst.msk [vmem:[#allocation10 + $0x8] sm:$0xff] %vm97_vm0, %v1428_v32 }
0x115b   :  { %1870 = shalt.err (!%p1867_p8)
}
0x115c   :  { %s1871_s22 = scalar_lea.hbm %s2301_s13, 256 }
0x115d   :  { %p1872_p9 = scmp.ne.s32.totalorder %s2301_s13, %s1871_s22  ;;  %p1875_p10 = scmp.lt.u32.totalorder %s1871_s22, %s2301_s13 }
0x115f   :  { %p1877_p11 = pnand %p1875_p10, %p1872_p9 }
0x1161   :  { %1880 = shalt.err (!%p1877_p11)
}
0x1162   :  { %s1910_s27 = smov 128  }
0x1163   :  { %1442 = dma.vmem_to_hbm [thread:$0]  %s1437_s19, 256, %s2301_s13, [#allocation4], %s1910_s27, %s1910_s27, %s1906_s7  }
0x1164   :  { %1887 = dma.done.wait [#allocation4], 256  }
0x1165   :  { %1888 = vsyncadd [#allocation4], 4294967040 }
0x1166   :  { %1446 = vsyncpa [#allocation3], 1 }
0x1167   :  { %1447 = vsyncpa [#allocation6], 1 }
0x1168   :  { %1448 = vsyncpa [#allocation9], 1 }
0x1169   :  { %1449 = vsyncpa [#allocation4], 1 }

</bundles_post_ra>
